<compile_context>
chip_gen: v7x
topology: tpu7x:2x2x1
jax: 0.10.0
libtpu: 0.0.40
codegen_flags: <defaults>
</compile_context>

<pallas_src>
import functools
import math

import jax
import jax.numpy as jnp
from jax.experimental import pallas as pl
from jax.experimental.pallas import tpu as pltpu


# ----------------------------- in-kernel helpers -----------------------------

def _bf16(x):
    return x.astype(jnp.bfloat16)


def _gelu(x):
    # exact (erf) GELU, as used by BERT; f32 math
    return 0.5 * x * (1.0 + jax.lax.erf(x * 0.7071067811865476))


def _layernorm(x, g, b, eps):
    mu = jnp.mean(x, axis=-1, keepdims=True)
    var = jnp.mean((x - mu) * (x - mu), axis=-1, keepdims=True)
    return (x - mu) * jax.lax.rsqrt(var + eps) * g + b


# ----------------------------- Pallas kernels -----------------------------

def _encoder_layer_kernel(x_ref, mask_ref,
                          in_ln_g_ref, in_ln_b_ref,
                          qkv_w_ref, qkv_b_ref, o_w_ref, o_b_ref,
                          ln1_g_ref, ln1_b_ref,
                          i_w_ref, i_b_ref, f_w_ref, f_b_ref,
                          ln2_g_ref, ln2_b_ref,
                          o_ref,
                          *, S, nH, Dh, eps, fuse_input_ln):
    """One full BERT encoder layer for a single sequence tile [S, H]."""
    H = nH * Dh
    x = x_ref[...].astype(jnp.float32)                                   # [S, H]

    if fuse_input_ln:
        # embedding LayerNorm fused into the first layer (saves a launch + HBM round trip)
        x = _layernorm(x, in_ln_g_ref[...], in_ln_b_ref[...], eps)

    # --- packed QKV projection: one MXU pass, bf16 inputs, f32 accumulation ---
    qkv = jnp.dot(_bf16(x), qkv_w_ref[...],
                  preferred_element_type=jnp.float32) + qkv_b_ref[...]   # [S, 3H]

    # scale folded into q (scales an [S, H] tensor once instead of the [S, S] scores per head)
    scale = 1.0 / math.sqrt(Dh)
    q2 = _bf16(qkv[:, 0:H] * scale)
    k2 = _bf16(qkv[:, H:2 * H])
    v2 = _bf16(qkv[:, 2 * H:3 * H])

    # --- head-batched attention: single einsum per step over all heads of this sequence ---
    q_h = jnp.stack([q2[:, h * Dh:(h + 1) * Dh] for h in range(nH)], axis=0)   # [nH, S, Dh]
    k_h = jnp.stack([k2[:, h * Dh:(h + 1) * Dh] for h in range(nH)], axis=0)
    v_h = jnp.stack([v2[:, h * Dh:(h + 1) * Dh] for h in range(nH)], axis=0)

    s = jnp.einsum('hqd,hkd->hqk', q_h, k_h,
                   preferred_element_type=jnp.float32)                   # [nH, S, S]
    s = s + mask_ref[...]                                                # [1, 1, S] additive bias
    s = s - jnp.max(s, axis=-1, keepdims=True)
    p = jnp.exp(s)
    l = jnp.sum(p, axis=-1, keepdims=True)                               # [nH, S, 1]
    ctx_h = jnp.einsum('hqk,hkd->hqd', _bf16(p), v_h,
                       preferred_element_type=jnp.float32)               # [nH, S, Dh]
    # normalize the small context (not the [S,S] probs); reciprocal runs on the EUP slot
    ctx_h = ctx_h * pl.reciprocal(l, approx=True)
    ctx = jnp.concatenate([ctx_h[h] for h in range(nH)], axis=-1)        # [S, H]

    # --- attention output projection + residual + LayerNorm ---
    attn = jnp.dot(_bf16(ctx), o_w_ref[...],
                   preferred_element_type=jnp.float32) + o_b_ref[...]
    x1 = _layernorm(attn + x, ln1_g_ref[...], ln1_b_ref[...], eps)

    # --- FFN: dense + GELU + dense + residual + LayerNorm ---
    hmid = _gelu(jnp.dot(_bf16(x1), i_w_ref[...],
                         preferred_element_type=jnp.float32) + i_b_ref[...])
    ffn = jnp.dot(_bf16(hmid), f_w_ref[...],
                  preferred_element_type=jnp.float32) + f_b_ref[...]
    o_ref[...] = _layernorm(ffn + x1, ln2_g_ref[...], ln2_b_ref[...], eps).astype(o_ref.dtype)


def _mlm_head_loss_kernel(x_ref, tr_w_ref, tr_b_ref, tr_g_ref, tr_beta_ref,
                          embT_ref, dec_b_ref, labels_ref, loss_ref,
                          h_s, m_s, l_s, lab_s, *, TV, eps):
    """Vocab-tiled MLM head: transform (once) + streamed tied decoder + online-LSE masked CE."""
    j = pl.program_id(0)

    @pl.when(j == 0)
    def _():
        # BertLMPredictionHead transform: dense + GELU + LayerNorm (computed once, cached bf16)
        h = jnp.dot(_bf16(x_ref[...]), tr_w_ref[...],
                    preferred_element_type=jnp.float32) + tr_b_ref[...]
        h = _gelu(h)
        h = _layernorm(h, tr_g_ref[...], tr_beta_ref[...], eps)
        h_s[...] = h.astype(jnp.bfloat16)
        m_s[...] = jnp.full_like(m_s, -jnp.inf)
        l_s[...] = jnp.zeros_like(l_s)
        lab_s[...] = jnp.zeros_like(lab_s)

    # decoder tied to word embeddings, pre-transposed [H, V] -> plain [M,H]x[H,TV] matmul per tile
    logits = jnp.dot(h_s[...], embT_ref[...],
                     preferred_element_type=jnp.float32) + dec_b_ref[...]       # [M, TV]

    labels = labels_ref[...]                                                    # [M, 1] int32
    col = jax.lax.broadcasted_iota(jnp.int32, logits.shape, 1) + j * TV
    onehot = (col == labels).astype(jnp.float32)
    lab_s[...] += jnp.sum(onehot * logits, axis=-1, keepdims=True)

    # online logsumexp over the vocab tiles
    m_new = jnp.maximum(m_s[...], jnp.max(logits, axis=-1, keepdims=True))
    l_s[...] = l_s[...] * jnp.exp(m_s[...] - m_new) + \
        jnp.sum(jnp.exp(logits - m_new), axis=-1, keepdims=True)
    m_s[...] = m_new

    @pl.when(j == pl.num_programs(0) - 1)
    def _():
        lse = m_s[...] + jnp.log(l_s[...])                                      # [M, 1]
        valid = (labels >= 0).astype(jnp.float32)
        per_tok = (lse - lab_s[...]) * valid
        loss_sum = jnp.sum(per_tok, axis=0, keepdims=True)                      # [1, 1]
        cnt = jnp.sum(valid, axis=0, keepdims=True)                             # [1, 1]
        # NOTE: cnt == 0 (all labels ignored) yields NaN, matching torch CrossEntropyLoss.
        loss_ref[...] = loss_sum / cnt


# ----------------------------- Pallas wrappers -----------------------------

_VMEM_LIMIT = 48 * 1024 * 1024   # v7x-aware: leave headroom within its 64 MiB physical VMEM


def _resident(arr):
    """Whole-array block with a constant index_map -> stays VMEM-resident across the grid."""
    n = arr.ndim
    return pl.BlockSpec(arr.shape, lambda i, _n=n: (0,) * _n)


def pallas_encoder_layer(x, add_mask3, layer, in_ln, *, B, S, nH, Dh,
                         fuse_input_ln, eps=1e-12):
    M, H = x.shape
    assert M == B * S
    I = layer["i_w"].shape[1]
    # bf16 inter-layer activations when the (S, H) tile is packed-sublane friendly
    # (real BERT: S % 16 == 0); keep f32 at tiny toy shapes.
    out_dtype = jnp.bfloat16 if S % 16 == 0 else jnp.float32
    # TODO(synk): at very small H (<128, toy config only) the output store is a masked
    #             partial store on v5e; real BERT H=768 is already lane-dense.

    flops = int(2 * M * H * 3 * H + 4 * B * nH * S * S * Dh
                + 2 * M * H * H + 4 * M * H * I + 12 * M * H)
    trans = int(B * nH * S * S + M * I + 4 * M)
    bytes_acc = int(4 * M * H + jnp.dtype(out_dtype).itemsize * M * H + 4 * B * S
                    + 2 * (3 * H * H + H * H + 2 * H * I) + 4 * (3 * H + 6 * H + I))

    in_specs = [
        pl.BlockSpec((S, H), lambda b: (b, 0)),          # x: one sequence per grid step
        pl.BlockSpec((1, 1, S), lambda b: (b, 0, 0)),    # additive mask for that sequence
        _resident(in_ln[0]), _resident(in_ln[1]),
        _resident(layer["qkv_w"]), _resident(layer["qkv_b"]),
        _resident(layer["o_w"]), _resident(layer["o_b"]),
        _resident(layer["ln1_g"]), _resident(layer["ln1_b"]),
        _resident(layer["i_w"]), _resident(layer["i_b"]),
        _resident(layer["f_w"]), _resident(layer["f_b"]),
        _resident(layer["ln2_g"]), _resident(layer["ln2_b"]),
    ]
    return pl.pallas_call(
        functools.partial(_encoder_layer_kernel, S=S, nH=nH, Dh=Dh, eps=eps,
                          fuse_input_ln=fuse_input_ln),
        out_shape=jax.ShapeDtypeStruct((M, H), out_dtype),
        grid=(B,),
        in_specs=in_specs,
        out_specs=pl.BlockSpec((S, H), lambda b: (b, 0)),
        compiler_params=pltpu.CompilerParams(
            dimension_semantics=("parallel",),           # 2-TC sharding on v7x; no-op elsewhere
            vmem_limit_bytes=_VMEM_LIMIT),
        cost_estimate=pl.CostEstimate(flops=flops, transcendentals=trans,
                                      bytes_accessed=bytes_acc),
    )(x, add_mask3, in_ln[0], in_ln[1],
      layer["qkv_w"], layer["qkv_b"], layer["o_w"], layer["o_b"],
      layer["ln1_g"], layer["ln1_b"],
      layer["i_w"], layer["i_b"], layer["f_w"], layer["f_b"],
      layer["ln2_g"], layer["ln2_b"])


def pallas_mlm_head_loss(x, params, embT, labels2d, *, eps=1e-12):
    M, H = x.shape
    V = embT.shape[1]
    TV = min(V, 512)                       # vocab tile streamed through VMEM
    assert V % TV == 0 and TV % 128 == 0

    flops = int(2 * M * H * H + 2 * M * H * V + 8 * M * V)
    trans = int(M * H + M * V + 4 * M)
    bytes_acc = int(x.dtype.itemsize * M * H + 2 * H * H + 2 * V * H
                    + 4 * (4 * H + V) + 4 * M + 4)

    in_specs = [
        pl.BlockSpec((M, H), lambda j: (0, 0)),          # final hidden states (resident)
        _resident(params["tr_w"]), _resident(params["tr_b"]),
        _resident(params["tr_ln_g"]), _resident(params["tr_ln_b"]),
        pl.BlockSpec((H, TV), lambda j: (0, j)),         # tied decoder weight, streamed over V
        pl.BlockSpec((1, TV), lambda j: (0, j)),         # decoder bias tile
        pl.BlockSpec((M, 1), lambda j: (0, 0)),          # labels (resident)
    ]
    out = pl.pallas_call(
        functools.partial(_mlm_head_loss_kernel, TV=TV, eps=eps),
        out_shape=jax.ShapeDtypeStruct((1, 1), jnp.float32),
        grid=(V // TV,),
        in_specs=in_specs,
        out_specs=pl.BlockSpec((1, 1), lambda j: (0, 0)),
        scratch_shapes=[pltpu.VMEM((M, H), jnp.bfloat16),   # cached transform output
                        pltpu.VMEM((M, 1), jnp.float32),    # running max
                        pltpu.VMEM((M, 1), jnp.float32),    # running sum-exp
                        pltpu.VMEM((M, 1), jnp.float32)],   # running label logit
        compiler_params=pltpu.CompilerParams(
            dimension_semantics=("arbitrary",),              # vocab axis carries the accumulator
            vmem_limit_bytes=_VMEM_LIMIT),
        cost_estimate=pl.CostEstimate(flops=flops, transcendentals=trans,
                                      bytes_accessed=bytes_acc),
    )(x, params["tr_w"], params["tr_b"], params["tr_ln_g"], params["tr_ln_b"],
      embT, params["dec_b"], labels2d)
    return out[0, 0]


# ----------------------------- BERT-for-MaskedLM forward -----------------------------

CFG = dict(vocab=128, hidden=32, heads=2, intermediate=64, layers=2,
           max_pos=32, type_vocab=2)


def init_params(key, cfg):
    H, V, I = cfg["hidden"], cfg["vocab"], cfg["intermediate"]
    keys = iter(jax.random.split(key, 64))
    nrm = lambda shape: (0.02 * jax.random.normal(next(keys), shape)).astype(jnp.float32)
    row = lambda n: jnp.zeros((1, n), jnp.float32)
    ones = lambda n: jnp.ones((1, n), jnp.float32)
    params = {
        # tied table (kept f32 in HBM; cast/transposed once for the decoder stream)
        "word_emb": nrm((V, H)),
        "pos_emb": nrm((cfg["max_pos"], H)),
        "type_emb": nrm((cfg["type_vocab"], H)),
        "emb_ln_g": ones(H), "emb_ln_b": row(H),
        "layers": [],
        # MLM head (BertLMPredictionHead): transform dense + LN, decoder tied to word_emb
        "tr_w": nrm((H, H)).astype(jnp.bfloat16), "tr_b": row(H),
        "tr_ln_g": ones(H), "tr_ln_b": row(H),
        "dec_b": row(V),
    }
    for _ in range(cfg["layers"]):
        qkv_w = jnp.concatenate([nrm((H, H)), nrm((H, H)), nrm((H, H))], axis=1)  # packed [H, 3H]
        params["layers"].append({
            "qkv_w": qkv_w.astype(jnp.bfloat16), "qkv_b": row(3 * H),
            "o_w": nrm((H, H)).astype(jnp.bfloat16), "o_b": row(H),
            "ln1_g": ones(H), "ln1_b": row(H),
            "i_w": nrm((H, I)).astype(jnp.bfloat16), "i_b": row(I),
            "f_w": nrm((I, H)).astype(jnp.bfloat16), "f_b": row(H),
            "ln2_g": ones(H), "ln2_b": row(H),
        })
    return params


def bert_lm_forward(params, input_ids, attention_mask, token_type_ids, labels):
    cfg = CFG
    B, S = input_ids.shape
    H, nH = cfg["hidden"], cfg["heads"]
    Dh = H // nH

    # ----- embeddings (gathers are plain-JAX glue; sum fused by XLA) -----
    word = jnp.take(params["word_emb"], input_ids, axis=0)                        # [B,S,H] f32
    pos = params["pos_emb"][:S][None, :, :]                                       # [1,S,H]
    typ = jnp.take(params["type_emb"], token_type_ids, axis=0)                    # [B,S,H]
    x = (word + pos + typ).reshape(B * S, H)   # pre-LN; embedding LN fused into layer 0 kernel

    # BERT extended attention mask: (1 - mask) * -10000, shaped [B, 1, S] additive bias
    add_mask3 = ((1.0 - attention_mask.astype(jnp.float32)) * -10000.0).reshape(B, 1, S)

    # ----- encoder: one fused Pallas kernel per layer, grid over sequences -----
    in_ln = (params["emb_ln_g"], params["emb_ln_b"])
    for li, layer in enumerate(params["layers"]):
        x = pallas_encoder_layer(x, add_mask3, layer, in_ln,
                                 B=B, S=S, nH=nH, Dh=Dh, fuse_input_ln=(li == 0))

    # ----- fused MLM head: vocab-tiled tied decoder ([H,V] stream) + online-LSE masked CE -----
    embT = params["word_emb"].T.astype(jnp.bfloat16)   # one-time transpose/cast; tie preserved
    loss = pallas_mlm_head_loss(x, params, embT, labels.reshape(B * S, 1).astype(jnp.int32))
    return {"loss": loss}


# TODO(synk): tokenizer / pretrained-checkpoint loading from the original module has no
#             Pallas equivalent; parameters are synthetic and dropout is identity (eval mode).


if __name__ == "__main__":
    key = jax.random.PRNGKey(0)
    pkey, lkey = jax.random.split(key)
    params = init_params(pkey, CFG)

    B, S = 2, 8
    input_ids = jax.random.randint(jax.random.fold_in(lkey, 0), (B, S), 0, CFG["vocab"], dtype=jnp.int32)
    attention_mask = jnp.array([[1, 1, 1, 1, 1, 1, 1, 1],
                                [1, 1, 1, 1, 1, 1, 0, 0]], dtype=jnp.int32)
    token_type_ids = jnp.array([[0, 0, 0, 0, 1, 1, 1, 1],
                                [0, 0, 0, 0, 0, 0, 0, 0]], dtype=jnp.int32)
    # labels: -100 everywhere except a few "masked" positions (BERT MLM convention)
    labels = jnp.full((B, S), -100, dtype=jnp.int32)
    masked_vals = jax.random.randint(jax.random.fold_in(lkey, 1), (3,), 0, CFG["vocab"], dtype=jnp.int32)
    labels = labels.at[0, 1].set(masked_vals[0])
    labels = labels.at[0, 5].set(masked_vals[1])
    labels = labels.at[1, 2].set(masked_vals[2])

    fwd = jax.jit(bert_lm_forward)
    out = fwd(params, input_ids, attention_mask, token_type_ids, labels)
    loss = jax.block_until_ready(out["loss"])
    assert jnp.isfinite(loss)
    print("KERNEL_OK")
</pallas_src>

<mosaic_0001>
module attributes {stable_mosaic.version = 11 : i64} {
  func.func @_encoder_layer_kernel(%arg0: i32, %arg1: memref<8x32xf32, #tpu.memory_space<vmem>>, %arg2: memref<1x1x8xf32, #tpu.memory_space<vmem>>, %arg3: memref<1x32xf32, #tpu.memory_space<vmem>>, %arg4: memref<1x32xf32, #tpu.memory_space<vmem>>, %arg5: memref<32x96xbf16, #tpu.memory_space<vmem>>, %arg6: memref<1x96xf32, #tpu.memory_space<vmem>>, %arg7: memref<32x32xbf16, #tpu.memory_space<vmem>>, %arg8: memref<1x32xf32, #tpu.memory_space<vmem>>, %arg9: memref<1x32xf32, #tpu.memory_space<vmem>>, %arg10: memref<1x32xf32, #tpu.memory_space<vmem>>, %arg11: memref<32x64xbf16, #tpu.memory_space<vmem>>, %arg12: memref<1x64xf32, #tpu.memory_space<vmem>>, %arg13: memref<64x32xbf16, #tpu.memory_space<vmem>>, %arg14: memref<1x32xf32, #tpu.memory_space<vmem>>, %arg15: memref<1x32xf32, #tpu.memory_space<vmem>>, %arg16: memref<1x32xf32, #tpu.memory_space<vmem>>, %arg17: memref<8x32xf32, #tpu.memory_space<vmem>>) attributes {dimension_semantics = [#tpu.dimension_semantics<parallel>], iteration_bounds = array<i64: 2>, scalar_prefetch = 0 : i64, scratch_operands = 0 : i64, tpu.core_type = #tpu.core_type<tc>, window_params = [{transform_indices = @transform_0, window_bounds = array<i64: 8, 32>}, {transform_indices = @transform_1, window_bounds = array<i64: 1, 1, 8>}, {pipeline_mode = #tpu.pipeline_mode<synchronous>, transform_indices = @transform_2, window_bounds = array<i64: 1, 32>}, {pipeline_mode = #tpu.pipeline_mode<synchronous>, transform_indices = @transform_3, window_bounds = array<i64: 1, 32>}, {pipeline_mode = #tpu.pipeline_mode<synchronous>, transform_indices = @transform_4, window_bounds = array<i64: 32, 96>}, {pipeline_mode = #tpu.pipeline_mode<synchronous>, transform_indices = @transform_5, window_bounds = array<i64: 1, 96>}, {pipeline_mode = #tpu.pipeline_mode<synchronous>, transform_indices = @transform_6, window_bounds = array<i64: 32, 32>}, {pipeline_mode = #tpu.pipeline_mode<synchronous>, transform_indices = @transform_7, window_bounds = array<i64: 1, 32>}, {pipeline_mode = #tpu.pipeline_mode<synchronous>, transform_indices = @transform_8, window_bounds = array<i64: 1, 32>}, {pipeline_mode = #tpu.pipeline_mode<synchronous>, transform_indices = @transform_9, window_bounds = array<i64: 1, 32>}, {pipeline_mode = #tpu.pipeline_mode<synchronous>, transform_indices = @transform_10, window_bounds = array<i64: 32, 64>}, {pipeline_mode = #tpu.pipeline_mode<synchronous>, transform_indices = @transform_11, window_bounds = array<i64: 1, 64>}, {pipeline_mode = #tpu.pipeline_mode<synchronous>, transform_indices = @transform_12, window_bounds = array<i64: 64, 32>}, {pipeline_mode = #tpu.pipeline_mode<synchronous>, transform_indices = @transform_13, window_bounds = array<i64: 1, 32>}, {pipeline_mode = #tpu.pipeline_mode<synchronous>, transform_indices = @transform_14, window_bounds = array<i64: 1, 32>}, {pipeline_mode = #tpu.pipeline_mode<synchronous>, transform_indices = @transform_15, window_bounds = array<i64: 1, 32>}, {transform_indices = @transform_16, window_bounds = array<i64: 8, 32>}]} {
    %c0 = arith.constant 0 : index
    %c0_0 = arith.constant 0 : index
    %0 = vector.load %arg1[%c0, %c0_0] : memref<8x32xf32, #tpu.memory_space<vmem>>, vector<8x32xf32>
    %c0_1 = arith.constant 0 : index
    %c0_2 = arith.constant 0 : index
    %1 = vector.load %arg3[%c0_1, %c0_2] : memref<1x32xf32, #tpu.memory_space<vmem>>, vector<1x32xf32>
    %c0_3 = arith.constant 0 : index
    %c0_4 = arith.constant 0 : index
    %2 = vector.load %arg4[%c0_3, %c0_4] : memref<1x32xf32, #tpu.memory_space<vmem>>, vector<1x32xf32>
    %cst = arith.constant dense<0.000000e+00> : vector<8xf32>
    %3 = vector.multi_reduction <add>, %0, %cst [1] : vector<8x32xf32> to vector<8xf32>
    %4 = vector.shape_cast %3 : vector<8xf32> to vector<8x1xf32>
    %cst_5 = arith.constant 3.200000e+01 : f32
    %5 = vector.broadcast %cst_5 : f32 to vector<8x1xf32>
    %6 = arith.divf %4, %5 : vector<8x1xf32>
    %7 = vector.broadcast %6 : vector<8x1xf32> to vector<8x32xf32>
    %8 = arith.subf %0, %7 : vector<8x32xf32>
    %9 = vector.broadcast %6 : vector<8x1xf32> to vector<8x32xf32>
    %10 = arith.subf %0, %9 : vector<8x32xf32>
    %11 = arith.mulf %8, %10 : vector<8x32xf32>
    %cst_6 = arith.constant dense<0.000000e+00> : vector<8xf32>
    %12 = vector.multi_reduction <add>, %11, %cst_6 [1] : vector<8x32xf32> to vector<8xf32>
    %13 = vector.shape_cast %12 : vector<8xf32> to vector<8x1xf32>
    %cst_7 = arith.constant 3.200000e+01 : f32
    %14 = vector.broadcast %cst_7 : f32 to vector<8x1xf32>
    %15 = arith.divf %13, %14 : vector<8x1xf32>
    %16 = vector.broadcast %6 : vector<8x1xf32> to vector<8x32xf32>
    %17 = arith.subf %0, %16 : vector<8x32xf32>
    %cst_8 = arith.constant 9.99999996E-13 : f32
    %18 = vector.broadcast %cst_8 : f32 to vector<8x1xf32>
    %19 = arith.addf %15, %18 : vector<8x1xf32>
    %20 = math.rsqrt %19 : vector<8x1xf32>
    %21 = vector.broadcast %20 : vector<8x1xf32> to vector<8x32xf32>
    %22 = arith.mulf %17, %21 : vector<8x32xf32>
    %23 = vector.broadcast %1 : vector<1x32xf32> to vector<8x32xf32>
    %24 = arith.mulf %22, %23 : vector<8x32xf32>
    %25 = vector.broadcast %2 : vector<1x32xf32> to vector<8x32xf32>
    %26 = arith.addf %24, %25 : vector<8x32xf32>
    %27 = arith.truncf %26 : vector<8x32xf32> to vector<8x32xbf16>
    %c0_9 = arith.constant 0 : index
    %c0_10 = arith.constant 0 : index
    %28 = vector.load %arg5[%c0_9, %c0_10] : memref<32x96xbf16, #tpu.memory_space<vmem>>, vector<32x96xbf16>
    %cst_11 = arith.constant dense<0.000000e+00> : vector<8x96xf32>
    %29 = tpu.matmul %27, %28, %cst_11 {dimension_numbers = #tpu.dot_dimension_numbers<[1], [0], [0], [1], [0, 0, 1, 1], [], []>} : vector<8x32xbf16>, vector<32x96xbf16>, vector<8x96xf32> -> vector<8x96xf32>
    %c0_12 = arith.constant 0 : index
    %c0_13 = arith.constant 0 : index
    %30 = vector.load %arg6[%c0_12, %c0_13] : memref<1x96xf32, #tpu.memory_space<vmem>>, vector<1x96xf32>
    %31 = vector.broadcast %30 : vector<1x96xf32> to vector<8x96xf32>
    %32 = arith.addf %29, %31 : vector<8x96xf32>
    %33 = vector.extract_strided_slice %32 {offsets = [0, 0], sizes = [8, 32], strides = [1, 1]} : vector<8x96xf32> to vector<8x32xf32>
    %cst_14 = arith.constant 2.500000e-01 : f32
    %34 = vector.broadcast %cst_14 : f32 to vector<8x32xf32>
    %35 = arith.mulf %33, %34 : vector<8x32xf32>
    %36 = arith.truncf %35 : vector<8x32xf32> to vector<8x32xbf16>
    %37 = vector.extract_strided_slice %32 {offsets = [0, 32], sizes = [8, 32], strides = [1, 1]} : vector<8x96xf32> to vector<8x32xf32>
    %38 = arith.truncf %37 : vector<8x32xf32> to vector<8x32xbf16>
    %39 = vector.extract_strided_slice %32 {offsets = [0, 64], sizes = [8, 32], strides = [1, 1]} : vector<8x96xf32> to vector<8x32xf32>
    %40 = arith.truncf %39 : vector<8x32xf32> to vector<8x32xbf16>
    %41 = vector.extract_strided_slice %36 {offsets = [0, 0], sizes = [8, 16], strides = [1, 1]} : vector<8x32xbf16> to vector<8x16xbf16>
    %42 = vector.extract_strided_slice %36 {offsets = [0, 16], sizes = [8, 16], strides = [1, 1]} : vector<8x32xbf16> to vector<8x16xbf16>
    %43 = vector.shape_cast %41 : vector<8x16xbf16> to vector<1x8x16xbf16>
    %44 = vector.shape_cast %42 : vector<8x16xbf16> to vector<1x8x16xbf16>
    %45 = tpu.concatenate %43, %44 in 0 : vector<1x8x16xbf16>, vector<1x8x16xbf16> -> vector<2x8x16xbf16>
    %46 = vector.extract_strided_slice %38 {offsets = [0, 0], sizes = [8, 16], strides = [1, 1]} : vector<8x32xbf16> to vector<8x16xbf16>
    %47 = vector.extract_strided_slice %38 {offsets = [0, 16], sizes = [8, 16], strides = [1, 1]} : vector<8x32xbf16> to vector<8x16xbf16>
    %48 = vector.shape_cast %46 : vector<8x16xbf16> to vector<1x8x16xbf16>
    %49 = vector.shape_cast %47 : vector<8x16xbf16> to vector<1x8x16xbf16>
    %50 = tpu.concatenate %48, %49 in 0 : vector<1x8x16xbf16>, vector<1x8x16xbf16> -> vector<2x8x16xbf16>
    %51 = vector.extract_strided_slice %40 {offsets = [0, 0], sizes = [8, 16], strides = [1, 1]} : vector<8x32xbf16> to vector<8x16xbf16>
    %52 = vector.extract_strided_slice %40 {offsets = [0, 16], sizes = [8, 16], strides = [1, 1]} : vector<8x32xbf16> to vector<8x16xbf16>
    %53 = vector.shape_cast %51 : vector<8x16xbf16> to vector<1x8x16xbf16>
    %54 = vector.shape_cast %52 : vector<8x16xbf16> to vector<1x8x16xbf16>
    %55 = tpu.concatenate %53, %54 in 0 : vector<1x8x16xbf16>, vector<1x8x16xbf16> -> vector<2x8x16xbf16>
    "tpu.trace_start"() <{level = 10 : i32, message = "hqd,hkd->hqk"}> : () -> ()
    %cst_15 = arith.constant dense<0.000000e+00> : vector<2x8x8xf32>
    %56 = tpu.matmul %45, %50, %cst_15 {dimension_numbers = #tpu.dot_dimension_numbers<[2], [2], [1], [1], [0, 0, 0, 1, 1, 1], [0], [0]>} : vector<2x8x16xbf16>, vector<2x8x16xbf16>, vector<2x8x8xf32> -> vector<2x8x8xf32>
    "tpu.trace_stop"() : () -> ()
    %c0_16 = arith.constant 0 : index
    %c0_17 = arith.constant 0 : index
    %c0_18 = arith.constant 0 : index
    %57 = vector.load %arg2[%c0_16, %c0_17, %c0_18] : memref<1x1x8xf32, #tpu.memory_space<vmem>>, vector<1x1x8xf32>
    %58 = vector.broadcast %57 : vector<1x1x8xf32> to vector<2x8x8xf32>
    %59 = arith.addf %56, %58 : vector<2x8x8xf32>
    %cst_19 = arith.constant dense<0xFF800000> : vector<2x8xf32>
    %60 = vector.multi_reduction <maximumf>, %59, %cst_19 [2] : vector<2x8x8xf32> to vector<2x8xf32>
    %61 = vector.shape_cast %60 : vector<2x8xf32> to vector<2x8x1xf32>
    %62 = vector.broadcast %61 : vector<2x8x1xf32> to vector<2x8x8xf32>
    %63 = arith.subf %59, %62 : vector<2x8x8xf32>
    %64 = math.exp %63 : vector<2x8x8xf32>
    %cst_20 = arith.constant dense<0.000000e+00> : vector<2x8xf32>
    %65 = vector.multi_reduction <add>, %64, %cst_20 [2] : vector<2x8x8xf32> to vector<2x8xf32>
    %66 = vector.shape_cast %65 : vector<2x8xf32> to vector<2x8x1xf32>
    %67 = arith.truncf %64 : vector<2x8x8xf32> to vector<2x8x8xbf16>
    "tpu.trace_start"() <{level = 10 : i32, message = "hqk,hkd->hqd"}> : () -> ()
    %cst_21 = arith.constant dense<0.000000e+00> : vector<2x8x16xf32>
    %68 = tpu.matmul %67, %55, %cst_21 {dimension_numbers = #tpu.dot_dimension_numbers<[2], [1], [1], [2], [0, 0, 0, 1, 1, 2], [0], [0]>} : vector<2x8x8xbf16>, vector<2x8x16xbf16>, vector<2x8x16xf32> -> vector<2x8x16xf32>
    "tpu.trace_stop"() : () -> ()
    %69 = tpu.reciprocal %66 {approx = true} : vector<2x8x1xf32> -> vector<2x8x1xf32>
    %70 = vector.broadcast %69 : vector<2x8x1xf32> to vector<2x8x16xf32>
    %71 = arith.mulf %68, %70 : vector<2x8x16xf32>
    %72 = vector.extract_strided_slice %71 {offsets = [0, 0, 0], sizes = [1, 8, 16], strides = [1, 1, 1]} : vector<2x8x16xf32> to vector<1x8x16xf32>
    %73 = vector.shape_cast %72 : vector<1x8x16xf32> to vector<8x16xf32>
    %74 = vector.extract_strided_slice %71 {offsets = [1, 0, 0], sizes = [1, 8, 16], strides = [1, 1, 1]} : vector<2x8x16xf32> to vector<1x8x16xf32>
    %75 = vector.shape_cast %74 : vector<1x8x16xf32> to vector<8x16xf32>
    %76 = tpu.concatenate %73, %75 in 1 : vector<8x16xf32>, vector<8x16xf32> -> vector<8x32xf32>
    %77 = arith.truncf %76 : vector<8x32xf32> to vector<8x32xbf16>
    %c0_22 = arith.constant 0 : index
    %c0_23 = arith.constant 0 : index
    %78 = vector.load %arg7[%c0_22, %c0_23] : memref<32x32xbf16, #tpu.memory_space<vmem>>, vector<32x32xbf16>
    %cst_24 = arith.constant dense<0.000000e+00> : vector<8x32xf32>
    %79 = tpu.matmul %77, %78, %cst_24 {dimension_numbers = #tpu.dot_dimension_numbers<[1], [0], [0], [1], [0, 0, 1, 1], [], []>} : vector<8x32xbf16>, vector<32x32xbf16>, vector<8x32xf32> -> vector<8x32xf32>
    %c0_25 = arith.constant 0 : index
    %c0_26 = arith.constant 0 : index
    %80 = vector.load %arg8[%c0_25, %c0_26] : memref<1x32xf32, #tpu.memory_space<vmem>>, vector<1x32xf32>
    %81 = vector.broadcast %80 : vector<1x32xf32> to vector<8x32xf32>
    %82 = arith.addf %79, %81 : vector<8x32xf32>
    %83 = arith.addf %82, %26 : vector<8x32xf32>
    %c0_27 = arith.constant 0 : index
    %c0_28 = arith.constant 0 : index
    %84 = vector.load %arg9[%c0_27, %c0_28] : memref<1x32xf32, #tpu.memory_space<vmem>>, vector<1x32xf32>
    %c0_29 = arith.constant 0 : index
    %c0_30 = arith.constant 0 : index
    %85 = vector.load %arg10[%c0_29, %c0_30] : memref<1x32xf32, #tpu.memory_space<vmem>>, vector<1x32xf32>
    %cst_31 = arith.constant dense<0.000000e+00> : vector<8xf32>
    %86 = vector.multi_reduction <add>, %83, %cst_31 [1] : vector<8x32xf32> to vector<8xf32>
    %87 = vector.shape_cast %86 : vector<8xf32> to vector<8x1xf32>
    %cst_32 = arith.constant 3.200000e+01 : f32
    %88 = vector.broadcast %cst_32 : f32 to vector<8x1xf32>
    %89 = arith.divf %87, %88 : vector<8x1xf32>
    %90 = vector.broadcast %89 : vector<8x1xf32> to vector<8x32xf32>
    %91 = arith.subf %83, %90 : vector<8x32xf32>
    %92 = vector.broadcast %89 : vector<8x1xf32> to vector<8x32xf32>
    %93 = arith.subf %83, %92 : vector<8x32xf32>
    %94 = arith.mulf %91, %93 : vector<8x32xf32>
    %cst_33 = arith.constant dense<0.000000e+00> : vector<8xf32>
    %95 = vector.multi_reduction <add>, %94, %cst_33 [1] : vector<8x32xf32> to vector<8xf32>
    %96 = vector.shape_cast %95 : vector<8xf32> to vector<8x1xf32>
    %cst_34 = arith.constant 3.200000e+01 : f32
    %97 = vector.broadcast %cst_34 : f32 to vector<8x1xf32>
    %98 = arith.divf %96, %97 : vector<8x1xf32>
    %99 = vector.broadcast %89 : vector<8x1xf32> to vector<8x32xf32>
    %100 = arith.subf %83, %99 : vector<8x32xf32>
    %cst_35 = arith.constant 9.99999996E-13 : f32
    %101 = vector.broadcast %cst_35 : f32 to vector<8x1xf32>
    %102 = arith.addf %98, %101 : vector<8x1xf32>
    %103 = math.rsqrt %102 : vector<8x1xf32>
    %104 = vector.broadcast %103 : vector<8x1xf32> to vector<8x32xf32>
    %105 = arith.mulf %100, %104 : vector<8x32xf32>
    %106 = vector.broadcast %84 : vector<1x32xf32> to vector<8x32xf32>
    %107 = arith.mulf %105, %106 : vector<8x32xf32>
    %108 = vector.broadcast %85 : vector<1x32xf32> to vector<8x32xf32>
    %109 = arith.addf %107, %108 : vector<8x32xf32>
    %110 = arith.truncf %109 : vector<8x32xf32> to vector<8x32xbf16>
    %c0_36 = arith.constant 0 : index
    %c0_37 = arith.constant 0 : index
    %111 = vector.load %arg11[%c0_36, %c0_37] : memref<32x64xbf16, #tpu.memory_space<vmem>>, vector<32x64xbf16>
    %cst_38 = arith.constant dense<0.000000e+00> : vector<8x64xf32>
    %112 = tpu.matmul %110, %111, %cst_38 {dimension_numbers = #tpu.dot_dimension_numbers<[1], [0], [0], [1], [0, 0, 1, 1], [], []>} : vector<8x32xbf16>, vector<32x64xbf16>, vector<8x64xf32> -> vector<8x64xf32>
    %c0_39 = arith.constant 0 : index
    %c0_40 = arith.constant 0 : index
    %113 = vector.load %arg12[%c0_39, %c0_40] : memref<1x64xf32, #tpu.memory_space<vmem>>, vector<1x64xf32>
    %114 = vector.broadcast %113 : vector<1x64xf32> to vector<8x64xf32>
    %115 = arith.addf %112, %114 : vector<8x64xf32>
    %cst_41 = arith.constant 5.000000e-01 : f32
    %116 = vector.broadcast %cst_41 : f32 to vector<8x64xf32>
    %117 = arith.mulf %116, %115 : vector<8x64xf32>
    %cst_42 = arith.constant 0.707106769 : f32
    %118 = vector.broadcast %cst_42 : f32 to vector<8x64xf32>
    %119 = arith.mulf %115, %118 : vector<8x64xf32>
    %120 = math.erf %119 : vector<8x64xf32>
    %cst_43 = arith.constant 1.000000e+00 : f32
    %121 = vector.broadcast %cst_43 : f32 to vector<8x64xf32>
    %122 = arith.addf %121, %120 : vector<8x64xf32>
    %123 = arith.mulf %117, %122 : vector<8x64xf32>
    %124 = arith.truncf %123 : vector<8x64xf32> to vector<8x64xbf16>
    %c0_44 = arith.constant 0 : index
    %c0_45 = arith.constant 0 : index
    %125 = vector.load %arg13[%c0_44, %c0_45] : memref<64x32xbf16, #tpu.memory_space<vmem>>, vector<64x32xbf16>
    %cst_46 = arith.constant dense<0.000000e+00> : vector<8x32xf32>
    %126 = tpu.matmul %124, %125, %cst_46 {dimension_numbers = #tpu.dot_dimension_numbers<[1], [0], [0], [1], [0, 0, 1, 1], [], []>} : vector<8x64xbf16>, vector<64x32xbf16>, vector<8x32xf32> -> vector<8x32xf32>
    %c0_47 = arith.constant 0 : index
    %c0_48 = arith.constant 0 : index
    %127 = vector.load %arg14[%c0_47, %c0_48] : memref<1x32xf32, #tpu.memory_space<vmem>>, vector<1x32xf32>
    %128 = vector.broadcast %127 : vector<1x32xf32> to vector<8x32xf32>
    %129 = arith.addf %126, %128 : vector<8x32xf32>
    %130 = arith.addf %129, %109 : vector<8x32xf32>
    %c0_49 = arith.constant 0 : index
    %c0_50 = arith.constant 0 : index
    %131 = vector.load %arg15[%c0_49, %c0_50] : memref<1x32xf32, #tpu.memory_space<vmem>>, vector<1x32xf32>
    %c0_51 = arith.constant 0 : index
    %c0_52 = arith.constant 0 : index
    %132 = vector.load %arg16[%c0_51, %c0_52] : memref<1x32xf32, #tpu.memory_space<vmem>>, vector<1x32xf32>
    %cst_53 = arith.constant dense<0.000000e+00> : vector<8xf32>
    %133 = vector.multi_reduction <add>, %130, %cst_53 [1] : vector<8x32xf32> to vector<8xf32>
    %134 = vector.shape_cast %133 : vector<8xf32> to vector<8x1xf32>
    %cst_54 = arith.constant 3.200000e+01 : f32
    %135 = vector.broadcast %cst_54 : f32 to vector<8x1xf32>
    %136 = arith.divf %134, %135 : vector<8x1xf32>
    %137 = vector.broadcast %136 : vector<8x1xf32> to vector<8x32xf32>
    %138 = arith.subf %130, %137 : vector<8x32xf32>
    %139 = vector.broadcast %136 : vector<8x1xf32> to vector<8x32xf32>
    %140 = arith.subf %130, %139 : vector<8x32xf32>
    %141 = arith.mulf %138, %140 : vector<8x32xf32>
    %cst_55 = arith.constant dense<0.000000e+00> : vector<8xf32>
    %142 = vector.multi_reduction <add>, %141, %cst_55 [1] : vector<8x32xf32> to vector<8xf32>
    %143 = vector.shape_cast %142 : vector<8xf32> to vector<8x1xf32>
    %cst_56 = arith.constant 3.200000e+01 : f32
    %144 = vector.broadcast %cst_56 : f32 to vector<8x1xf32>
    %145 = arith.divf %143, %144 : vector<8x1xf32>
    %146 = vector.broadcast %136 : vector<8x1xf32> to vector<8x32xf32>
    %147 = arith.subf %130, %146 : vector<8x32xf32>
    %cst_57 = arith.constant 9.99999996E-13 : f32
    %148 = vector.broadcast %cst_57 : f32 to vector<8x1xf32>
    %149 = arith.addf %145, %148 : vector<8x1xf32>
    %150 = math.rsqrt %149 : vector<8x1xf32>
    %151 = vector.broadcast %150 : vector<8x1xf32> to vector<8x32xf32>
    %152 = arith.mulf %147, %151 : vector<8x32xf32>
    %153 = vector.broadcast %131 : vector<1x32xf32> to vector<8x32xf32>
    %154 = arith.mulf %152, %153 : vector<8x32xf32>
    %155 = vector.broadcast %132 : vector<1x32xf32> to vector<8x32xf32>
    %156 = arith.addf %154, %155 : vector<8x32xf32>
    %c0_58 = arith.constant 0 : index
    %c0_59 = arith.constant 0 : index
    %157 = vector.load %arg17[%c0_58, %c0_59] : memref<8x32xf32, #tpu.memory_space<vmem>>, vector<8x32xf32>
    tpu.vector_store %arg17[%c0_58, %c0_59], %156 {strides = array<i32>} : memref<8x32xf32, #tpu.memory_space<vmem>>, vector<8x32xf32>,
    return
  }
  func.func @transform_0(%arg0: i32) -> (i32, i32) {
    %c0_i32 = arith.constant 0 : i32
    %c0_i32_0 = arith.constant 0 : i32
    return %arg0, %c0_i32 : i32, i32
  }
  func.func @transform_1(%arg0: i32) -> (i32, i32, i32) {
    %c0_i32 = arith.constant 0 : i32
    %c0_i32_0 = arith.constant 0 : i32
    %c0_i32_1 = arith.constant 0 : i32
    return %arg0, %c0_i32, %c0_i32_0 : i32, i32, i32
  }
  func.func @transform_2(%arg0: i32) -> (i32, i32) {
    %c0_i32 = arith.constant 0 : i32
    %c0_i32_0 = arith.constant 0 : i32
    %c0_i32_1 = arith.constant 0 : i32
    return %c0_i32, %c0_i32_0 : i32, i32
  }
  func.func @transform_3(%arg0: i32) -> (i32, i32) {
    %c0_i32 = arith.constant 0 : i32
    %c0_i32_0 = arith.constant 0 : i32
    %c0_i32_1 = arith.constant 0 : i32
    return %c0_i32, %c0_i32_0 : i32, i32
  }
  func.func @transform_4(%arg0: i32) -> (i32, i32) {
    %c0_i32 = arith.constant 0 : i32
    %c0_i32_0 = arith.constant 0 : i32
    %c0_i32_1 = arith.constant 0 : i32
    return %c0_i32, %c0_i32_0 : i32, i32
  }
  func.func @transform_5(%arg0: i32) -> (i32, i32) {
    %c0_i32 = arith.constant 0 : i32
    %c0_i32_0 = arith.constant 0 : i32
    %c0_i32_1 = arith.constant 0 : i32
    return %c0_i32, %c0_i32_0 : i32, i32
  }
  func.func @transform_6(%arg0: i32) -> (i32, i32) {
    %c0_i32 = arith.constant 0 : i32
    %c0_i32_0 = arith.constant 0 : i32
    %c0_i32_1 = arith.constant 0 : i32
    return %c0_i32, %c0_i32_0 : i32, i32
  }
  func.func @transform_7(%arg0: i32) -> (i32, i32) {
    %c0_i32 = arith.constant 0 : i32
    %c0_i32_0 = arith.constant 0 : i32
    %c0_i32_1 = arith.constant 0 : i32
    return %c0_i32, %c0_i32_0 : i32, i32
  }
  func.func @transform_8(%arg0: i32) -> (i32, i32) {
    %c0_i32 = arith.constant 0 : i32
    %c0_i32_0 = arith.constant 0 : i32
    %c0_i32_1 = arith.constant 0 : i32
    return %c0_i32, %c0_i32_0 : i32, i32
  }
  func.func @transform_9(%arg0: i32) -> (i32, i32) {
    %c0_i32 = arith.constant 0 : i32
    %c0_i32_0 = arith.constant 0 : i32
    %c0_i32_1 = arith.constant 0 : i32
    return %c0_i32, %c0_i32_0 : i32, i32
  }
  func.func @transform_10(%arg0: i32) -> (i32, i32) {
    %c0_i32 = arith.constant 0 : i32
    %c0_i32_0 = arith.constant 0 : i32
    %c0_i32_1 = arith.constant 0 : i32
    return %c0_i32, %c0_i32_0 : i32, i32
  }
  func.func @transform_11(%arg0: i32) -> (i32, i32) {
    %c0_i32 = arith.constant 0 : i32
    %c0_i32_0 = arith.constant 0 : i32
    %c0_i32_1 = arith.constant 0 : i32
    return %c0_i32, %c0_i32_0 : i32, i32
  }
  func.func @transform_12(%arg0: i32) -> (i32, i32) {
    %c0_i32 = arith.constant 0 : i32
    %c0_i32_0 = arith.constant 0 : i32
    %c0_i32_1 = arith.constant 0 : i32
    return %c0_i32, %c0_i32_0 : i32, i32
  }
  func.func @transform_13(%arg0: i32) -> (i32, i32) {
    %c0_i32 = arith.constant 0 : i32
    %c0_i32_0 = arith.constant 0 : i32
    %c0_i32_1 = arith.constant 0 : i32
    return %c0_i32, %c0_i32_0 : i32, i32
  }
  func.func @transform_14(%arg0: i32) -> (i32, i32) {
    %c0_i32 = arith.constant 0 : i32
    %c0_i32_0 = arith.constant 0 : i32
    %c0_i32_1 = arith.constant 0 : i32
    return %c0_i32, %c0_i32_0 : i32, i32
  }
  func.func @transform_15(%arg0: i32) -> (i32, i32) {
    %c0_i32 = arith.constant 0 : i32
    %c0_i32_0 = arith.constant 0 : i32
    %c0_i32_1 = arith.constant 0 : i32
    return %c0_i32, %c0_i32_0 : i32, i32
  }
  func.func @transform_16(%arg0: i32) -> (i32, i32) {
    %c0_i32 = arith.constant 0 : i32
    %c0_i32_0 = arith.constant 0 : i32
    return %arg0, %c0_i32 : i32, i32
  }
}

module attributes {stable_mosaic.version = 11 : i64} {
  func.func @_encoder_layer_kernel(%arg0: i32, %arg1: memref<8x32xf32, #tpu.memory_space<vmem>>, %arg2: memref<1x1x8xf32, #tpu.memory_space<vmem>>, %arg3: memref<1x32xf32, #tpu.memory_space<vmem>>, %arg4: memref<1x32xf32, #tpu.memory_space<vmem>>, %arg5: memref<32x96xbf16, #tpu.memory_space<vmem>>, %arg6: memref<1x96xf32, #tpu.memory_space<vmem>>, %arg7: memref<32x32xbf16, #tpu.memory_space<vmem>>, %arg8: memref<1x32xf32, #tpu.memory_space<vmem>>, %arg9: memref<1x32xf32, #tpu.memory_space<vmem>>, %arg10: memref<1x32xf32, #tpu.memory_space<vmem>>, %arg11: memref<32x64xbf16, #tpu.memory_space<vmem>>, %arg12: memref<1x64xf32, #tpu.memory_space<vmem>>, %arg13: memref<64x32xbf16, #tpu.memory_space<vmem>>, %arg14: memref<1x32xf32, #tpu.memory_space<vmem>>, %arg15: memref<1x32xf32, #tpu.memory_space<vmem>>, %arg16: memref<1x32xf32, #tpu.memory_space<vmem>>, %arg17: memref<8x32xf32, #tpu.memory_space<vmem>>) attributes {dimension_semantics = [#tpu.dimension_semantics<parallel>], iteration_bounds = array<i64: 2>, scalar_prefetch = 0 : i64, scratch_operands = 0 : i64, tpu.core_type = #tpu.core_type<tc>, window_params = [{transform_indices = @transform_0, window_bounds = array<i64: 8, 32>}, {transform_indices = @transform_1, window_bounds = array<i64: 1, 1, 8>}, {pipeline_mode = #tpu.pipeline_mode<synchronous>, transform_indices = @transform_2, window_bounds = array<i64: 1, 32>}, {pipeline_mode = #tpu.pipeline_mode<synchronous>, transform_indices = @transform_3, window_bounds = array<i64: 1, 32>}, {pipeline_mode = #tpu.pipeline_mode<synchronous>, transform_indices = @transform_4, window_bounds = array<i64: 32, 96>}, {pipeline_mode = #tpu.pipeline_mode<synchronous>, transform_indices = @transform_5, window_bounds = array<i64: 1, 96>}, {pipeline_mode = #tpu.pipeline_mode<synchronous>, transform_indices = @transform_6, window_bounds = array<i64: 32, 32>}, {pipeline_mode = #tpu.pipeline_mode<synchronous>, transform_indices = @transform_7, window_bounds = array<i64: 1, 32>}, {pipeline_mode = #tpu.pipeline_mode<synchronous>, transform_indices = @transform_8, window_bounds = array<i64: 1, 32>}, {pipeline_mode = #tpu.pipeline_mode<synchronous>, transform_indices = @transform_9, window_bounds = array<i64: 1, 32>}, {pipeline_mode = #tpu.pipeline_mode<synchronous>, transform_indices = @transform_10, window_bounds = array<i64: 32, 64>}, {pipeline_mode = #tpu.pipeline_mode<synchronous>, transform_indices = @transform_11, window_bounds = array<i64: 1, 64>}, {pipeline_mode = #tpu.pipeline_mode<synchronous>, transform_indices = @transform_12, window_bounds = array<i64: 64, 32>}, {pipeline_mode = #tpu.pipeline_mode<synchronous>, transform_indices = @transform_13, window_bounds = array<i64: 1, 32>}, {pipeline_mode = #tpu.pipeline_mode<synchronous>, transform_indices = @transform_14, window_bounds = array<i64: 1, 32>}, {pipeline_mode = #tpu.pipeline_mode<synchronous>, transform_indices = @transform_15, window_bounds = array<i64: 1, 32>}, {transform_indices = @transform_16, window_bounds = array<i64: 8, 32>}]} {
    %c0 = arith.constant 0 : index
    %c0_0 = arith.constant 0 : index
    %0 = vector.load %arg1[%c0, %c0_0] : memref<8x32xf32, #tpu.memory_space<vmem>>, vector<8x32xf32>
    %1 = arith.truncf %0 : vector<8x32xf32> to vector<8x32xbf16>
    %c0_1 = arith.constant 0 : index
    %c0_2 = arith.constant 0 : index
    %2 = vector.load %arg5[%c0_1, %c0_2] : memref<32x96xbf16, #tpu.memory_space<vmem>>, vector<32x96xbf16>
    %cst = arith.constant dense<0.000000e+00> : vector<8x96xf32>
    %3 = tpu.matmul %1, %2, %cst {dimension_numbers = #tpu.dot_dimension_numbers<[1], [0], [0], [1], [0, 0, 1, 1], [], []>} : vector<8x32xbf16>, vector<32x96xbf16>, vector<8x96xf32> -> vector<8x96xf32>
    %c0_3 = arith.constant 0 : index
    %c0_4 = arith.constant 0 : index
    %4 = vector.load %arg6[%c0_3, %c0_4] : memref<1x96xf32, #tpu.memory_space<vmem>>, vector<1x96xf32>
    %5 = vector.broadcast %4 : vector<1x96xf32> to vector<8x96xf32>
    %6 = arith.addf %3, %5 : vector<8x96xf32>
    %7 = vector.extract_strided_slice %6 {offsets = [0, 0], sizes = [8, 32], strides = [1, 1]} : vector<8x96xf32> to vector<8x32xf32>
    %cst_5 = arith.constant 2.500000e-01 : f32
    %8 = vector.broadcast %cst_5 : f32 to vector<8x32xf32>
    %9 = arith.mulf %7, %8 : vector<8x32xf32>
    %10 = arith.truncf %9 : vector<8x32xf32> to vector<8x32xbf16>
    %11 = vector.extract_strided_slice %6 {offsets = [0, 32], sizes = [8, 32], strides = [1, 1]} : vector<8x96xf32> to vector<8x32xf32>
    %12 = arith.truncf %11 : vector<8x32xf32> to vector<8x32xbf16>
    %13 = vector.extract_strided_slice %6 {offsets = [0, 64], sizes = [8, 32], strides = [1, 1]} : vector<8x96xf32> to vector<8x32xf32>
    %14 = arith.truncf %13 : vector<8x32xf32> to vector<8x32xbf16>
    %15 = vector.extract_strided_slice %10 {offsets = [0, 0], sizes = [8, 16], strides = [1, 1]} : vector<8x32xbf16> to vector<8x16xbf16>
    %16 = vector.extract_strided_slice %10 {offsets = [0, 16], sizes = [8, 16], strides = [1, 1]} : vector<8x32xbf16> to vector<8x16xbf16>
    %17 = vector.shape_cast %15 : vector<8x16xbf16> to vector<1x8x16xbf16>
    %18 = vector.shape_cast %16 : vector<8x16xbf16> to vector<1x8x16xbf16>
    %19 = tpu.concatenate %17, %18 in 0 : vector<1x8x16xbf16>, vector<1x8x16xbf16> -> vector<2x8x16xbf16>
    %20 = vector.extract_strided_slice %12 {offsets = [0, 0], sizes = [8, 16], strides = [1, 1]} : vector<8x32xbf16> to vector<8x16xbf16>
    %21 = vector.extract_strided_slice %12 {offsets = [0, 16], sizes = [8, 16], strides = [1, 1]} : vector<8x32xbf16> to vector<8x16xbf16>
    %22 = vector.shape_cast %20 : vector<8x16xbf16> to vector<1x8x16xbf16>
    %23 = vector.shape_cast %21 : vector<8x16xbf16> to vector<1x8x16xbf16>
    %24 = tpu.concatenate %22, %23 in 0 : vector<1x8x16xbf16>, vector<1x8x16xbf16> -> vector<2x8x16xbf16>
    %25 = vector.extract_strided_slice %14 {offsets = [0, 0], sizes = [8, 16], strides = [1, 1]} : vector<8x32xbf16> to vector<8x16xbf16>
    %26 = vector.extract_strided_slice %14 {offsets = [0, 16], sizes = [8, 16], strides = [1, 1]} : vector<8x32xbf16> to vector<8x16xbf16>
    %27 = vector.shape_cast %25 : vector<8x16xbf16> to vector<1x8x16xbf16>
    %28 = vector.shape_cast %26 : vector<8x16xbf16> to vector<1x8x16xbf16>
    %29 = tpu.concatenate %27, %28 in 0 : vector<1x8x16xbf16>, vector<1x8x16xbf16> -> vector<2x8x16xbf16>
    "tpu.trace_start"() <{level = 10 : i32, message = "hqd,hkd->hqk"}> : () -> ()
    %cst_6 = arith.constant dense<0.000000e+00> : vector<2x8x8xf32>
    %30 = tpu.matmul %19, %24, %cst_6 {dimension_numbers = #tpu.dot_dimension_numbers<[2], [2], [1], [1], [0, 0, 0, 1, 1, 1], [0], [0]>} : vector<2x8x16xbf16>, vector<2x8x16xbf16>, vector<2x8x8xf32> -> vector<2x8x8xf32>
    "tpu.trace_stop"() : () -> ()
    %c0_7 = arith.constant 0 : index
    %c0_8 = arith.constant 0 : index
    %c0_9 = arith.constant 0 : index
    %31 = vector.load %arg2[%c0_7, %c0_8, %c0_9] : memref<1x1x8xf32, #tpu.memory_space<vmem>>, vector<1x1x8xf32>
    %32 = vector.broadcast %31 : vector<1x1x8xf32> to vector<2x8x8xf32>
    %33 = arith.addf %30, %32 : vector<2x8x8xf32>
    %cst_10 = arith.constant dense<0xFF800000> : vector<2x8xf32>
    %34 = vector.multi_reduction <maximumf>, %33, %cst_10 [2] : vector<2x8x8xf32> to vector<2x8xf32>
    %35 = vector.shape_cast %34 : vector<2x8xf32> to vector<2x8x1xf32>
    %36 = vector.broadcast %35 : vector<2x8x1xf32> to vector<2x8x8xf32>
    %37 = arith.subf %33, %36 : vector<2x8x8xf32>
    %38 = math.exp %37 : vector<2x8x8xf32>
    %cst_11 = arith.constant dense<0.000000e+00> : vector<2x8xf32>
    %39 = vector.multi_reduction <add>, %38, %cst_11 [2] : vector<2x8x8xf32> to vector<2x8xf32>
    %40 = vector.shape_cast %39 : vector<2x8xf32> to vector<2x8x1xf32>
    %41 = arith.truncf %38 : vector<2x8x8xf32> to vector<2x8x8xbf16>
    "tpu.trace_start"() <{level = 10 : i32, message = "hqk,hkd->hqd"}> : () -> ()
    %cst_12 = arith.constant dense<0.000000e+00> : vector<2x8x16xf32>
    %42 = tpu.matmul %41, %29, %cst_12 {dimension_numbers = #tpu.dot_dimension_numbers<[2], [1], [1], [2], [0, 0, 0, 1, 1, 2], [0], [0]>} : vector<2x8x8xbf16>, vector<2x8x16xbf16>, vector<2x8x16xf32> -> vector<2x8x16xf32>
    "tpu.trace_stop"() : () -> ()
    %43 = tpu.reciprocal %40 {approx = true} : vector<2x8x1xf32> -> vector<2x8x1xf32>
    %44 = vector.broadcast %43 : vector<2x8x1xf32> to vector<2x8x16xf32>
    %45 = arith.mulf %42, %44 : vector<2x8x16xf32>
    %46 = vector.extract_strided_slice %45 {offsets = [0, 0, 0], sizes = [1, 8, 16], strides = [1, 1, 1]} : vector<2x8x16xf32> to vector<1x8x16xf32>
    %47 = vector.shape_cast %46 : vector<1x8x16xf32> to vector<8x16xf32>
    %48 = vector.extract_strided_slice %45 {offsets = [1, 0, 0], sizes = [1, 8, 16], strides = [1, 1, 1]} : vector<2x8x16xf32> to vector<1x8x16xf32>
    %49 = vector.shape_cast %48 : vector<1x8x16xf32> to vector<8x16xf32>
    %50 = tpu.concatenate %47, %49 in 1 : vector<8x16xf32>, vector<8x16xf32> -> vector<8x32xf32>
    %51 = arith.truncf %50 : vector<8x32xf32> to vector<8x32xbf16>
    %c0_13 = arith.constant 0 : index
    %c0_14 = arith.constant 0 : index
    %52 = vector.load %arg7[%c0_13, %c0_14] : memref<32x32xbf16, #tpu.memory_space<vmem>>, vector<32x32xbf16>
    %cst_15 = arith.constant dense<0.000000e+00> : vector<8x32xf32>
    %53 = tpu.matmul %51, %52, %cst_15 {dimension_numbers = #tpu.dot_dimension_numbers<[1], [0], [0], [1], [0, 0, 1, 1], [], []>} : vector<8x32xbf16>, vector<32x32xbf16>, vector<8x32xf32> -> vector<8x32xf32>
    %c0_16 = arith.constant 0 : index
    %c0_17 = arith.constant 0 : index
    %54 = vector.load %arg8[%c0_16, %c0_17] : memref<1x32xf32, #tpu.memory_space<vmem>>, vector<1x32xf32>
    %55 = vector.broadcast %54 : vector<1x32xf32> to vector<8x32xf32>
    %56 = arith.addf %53, %55 : vector<8x32xf32>
    %57 = arith.addf %56, %0 : vector<8x32xf32>
    %c0_18 = arith.constant 0 : index
    %c0_19 = arith.constant 0 : index
    %58 = vector.load %arg9[%c0_18, %c0_19] : memref<1x32xf32, #tpu.memory_space<vmem>>, vector<1x32xf32>
    %c0_20 = arith.constant 0 : index
    %c0_21 = arith.constant 0 : index
    %59 = vector.load %arg10[%c0_20, %c0_21] : memref<1x32xf32, #tpu.memory_space<vmem>>, vector<1x32xf32>
    %cst_22 = arith.constant dense<0.000000e+00> : vector<8xf32>
    %60 = vector.multi_reduction <add>, %57, %cst_22 [1] : vector<8x32xf32> to vector<8xf32>
    %61 = vector.shape_cast %60 : vector<8xf32> to vector<8x1xf32>
    %cst_23 = arith.constant 3.200000e+01 : f32
    %62 = vector.broadcast %cst_23 : f32 to vector<8x1xf32>
    %63 = arith.divf %61, %62 : vector<8x1xf32>
    %64 = vector.broadcast %63 : vector<8x1xf32> to vector<8x32xf32>
    %65 = arith.subf %57, %64 : vector<8x32xf32>
    %66 = vector.broadcast %63 : vector<8x1xf32> to vector<8x32xf32>
    %67 = arith.subf %57, %66 : vector<8x32xf32>
    %68 = arith.mulf %65, %67 : vector<8x32xf32>
    %cst_24 = arith.constant dense<0.000000e+00> : vector<8xf32>
    %69 = vector.multi_reduction <add>, %68, %cst_24 [1] : vector<8x32xf32> to vector<8xf32>
    %70 = vector.shape_cast %69 : vector<8xf32> to vector<8x1xf32>
    %cst_25 = arith.constant 3.200000e+01 : f32
    %71 = vector.broadcast %cst_25 : f32 to vector<8x1xf32>
    %72 = arith.divf %70, %71 : vector<8x1xf32>
    %73 = vector.broadcast %63 : vector<8x1xf32> to vector<8x32xf32>
    %74 = arith.subf %57, %73 : vector<8x32xf32>
    %cst_26 = arith.constant 9.99999996E-13 : f32
    %75 = vector.broadcast %cst_26 : f32 to vector<8x1xf32>
    %76 = arith.addf %72, %75 : vector<8x1xf32>
    %77 = math.rsqrt %76 : vector<8x1xf32>
    %78 = vector.broadcast %77 : vector<8x1xf32> to vector<8x32xf32>
    %79 = arith.mulf %74, %78 : vector<8x32xf32>
    %80 = vector.broadcast %58 : vector<1x32xf32> to vector<8x32xf32>
    %81 = arith.mulf %79, %80 : vector<8x32xf32>
    %82 = vector.broadcast %59 : vector<1x32xf32> to vector<8x32xf32>
    %83 = arith.addf %81, %82 : vector<8x32xf32>
    %84 = arith.truncf %83 : vector<8x32xf32> to vector<8x32xbf16>
    %c0_27 = arith.constant 0 : index
    %c0_28 = arith.constant 0 : index
    %85 = vector.load %arg11[%c0_27, %c0_28] : memref<32x64xbf16, #tpu.memory_space<vmem>>, vector<32x64xbf16>
    %cst_29 = arith.constant dense<0.000000e+00> : vector<8x64xf32>
    %86 = tpu.matmul %84, %85, %cst_29 {dimension_numbers = #tpu.dot_dimension_numbers<[1], [0], [0], [1], [0, 0, 1, 1], [], []>} : vector<8x32xbf16>, vector<32x64xbf16>, vector<8x64xf32> -> vector<8x64xf32>
    %c0_30 = arith.constant 0 : index
    %c0_31 = arith.constant 0 : index
    %87 = vector.load %arg12[%c0_30, %c0_31] : memref<1x64xf32, #tpu.memory_space<vmem>>, vector<1x64xf32>
    %88 = vector.broadcast %87 : vector<1x64xf32> to vector<8x64xf32>
    %89 = arith.addf %86, %88 : vector<8x64xf32>
    %cst_32 = arith.constant 5.000000e-01 : f32
    %90 = vector.broadcast %cst_32 : f32 to vector<8x64xf32>
    %91 = arith.mulf %90, %89 : vector<8x64xf32>
    %cst_33 = arith.constant 0.707106769 : f32
    %92 = vector.broadcast %cst_33 : f32 to vector<8x64xf32>
    %93 = arith.mulf %89, %92 : vector<8x64xf32>
    %94 = math.erf %93 : vector<8x64xf32>
    %cst_34 = arith.constant 1.000000e+00 : f32
    %95 = vector.broadcast %cst_34 : f32 to vector<8x64xf32>
    %96 = arith.addf %95, %94 : vector<8x64xf32>
    %97 = arith.mulf %91, %96 : vector<8x64xf32>
    %98 = arith.truncf %97 : vector<8x64xf32> to vector<8x64xbf16>
    %c0_35 = arith.constant 0 : index
    %c0_36 = arith.constant 0 : index
    %99 = vector.load %arg13[%c0_35, %c0_36] : memref<64x32xbf16, #tpu.memory_space<vmem>>, vector<64x32xbf16>
    %cst_37 = arith.constant dense<0.000000e+00> : vector<8x32xf32>
    %100 = tpu.matmul %98, %99, %cst_37 {dimension_numbers = #tpu.dot_dimension_numbers<[1], [0], [0], [1], [0, 0, 1, 1], [], []>} : vector<8x64xbf16>, vector<64x32xbf16>, vector<8x32xf32> -> vector<8x32xf32>
    %c0_38 = arith.constant 0 : index
    %c0_39 = arith.constant 0 : index
    %101 = vector.load %arg14[%c0_38, %c0_39] : memref<1x32xf32, #tpu.memory_space<vmem>>, vector<1x32xf32>
    %102 = vector.broadcast %101 : vector<1x32xf32> to vector<8x32xf32>
    %103 = arith.addf %100, %102 : vector<8x32xf32>
    %104 = arith.addf %103, %83 : vector<8x32xf32>
    %c0_40 = arith.constant 0 : index
    %c0_41 = arith.constant 0 : index
    %105 = vector.load %arg15[%c0_40, %c0_41] : memref<1x32xf32, #tpu.memory_space<vmem>>, vector<1x32xf32>
    %c0_42 = arith.constant 0 : index
    %c0_43 = arith.constant 0 : index
    %106 = vector.load %arg16[%c0_42, %c0_43] : memref<1x32xf32, #tpu.memory_space<vmem>>, vector<1x32xf32>
    %cst_44 = arith.constant dense<0.000000e+00> : vector<8xf32>
    %107 = vector.multi_reduction <add>, %104, %cst_44 [1] : vector<8x32xf32> to vector<8xf32>
    %108 = vector.shape_cast %107 : vector<8xf32> to vector<8x1xf32>
    %cst_45 = arith.constant 3.200000e+01 : f32
    %109 = vector.broadcast %cst_45 : f32 to vector<8x1xf32>
    %110 = arith.divf %108, %109 : vector<8x1xf32>
    %111 = vector.broadcast %110 : vector<8x1xf32> to vector<8x32xf32>
    %112 = arith.subf %104, %111 : vector<8x32xf32>
    %113 = vector.broadcast %110 : vector<8x1xf32> to vector<8x32xf32>
    %114 = arith.subf %104, %113 : vector<8x32xf32>
    %115 = arith.mulf %112, %114 : vector<8x32xf32>
    %cst_46 = arith.constant dense<0.000000e+00> : vector<8xf32>
    %116 = vector.multi_reduction <add>, %115, %cst_46 [1] : vector<8x32xf32> to vector<8xf32>
    %117 = vector.shape_cast %116 : vector<8xf32> to vector<8x1xf32>
    %cst_47 = arith.constant 3.200000e+01 : f32
    %118 = vector.broadcast %cst_47 : f32 to vector<8x1xf32>
    %119 = arith.divf %117, %118 : vector<8x1xf32>
    %120 = vector.broadcast %110 : vector<8x1xf32> to vector<8x32xf32>
    %121 = arith.subf %104, %120 : vector<8x32xf32>
    %cst_48 = arith.constant 9.99999996E-13 : f32
    %122 = vector.broadcast %cst_48 : f32 to vector<8x1xf32>
    %123 = arith.addf %119, %122 : vector<8x1xf32>
    %124 = math.rsqrt %123 : vector<8x1xf32>
    %125 = vector.broadcast %124 : vector<8x1xf32> to vector<8x32xf32>
    %126 = arith.mulf %121, %125 : vector<8x32xf32>
    %127 = vector.broadcast %105 : vector<1x32xf32> to vector<8x32xf32>
    %128 = arith.mulf %126, %127 : vector<8x32xf32>
    %129 = vector.broadcast %106 : vector<1x32xf32> to vector<8x32xf32>
    %130 = arith.addf %128, %129 : vector<8x32xf32>
    %c0_49 = arith.constant 0 : index
    %c0_50 = arith.constant 0 : index
    %131 = vector.load %arg17[%c0_49, %c0_50] : memref<8x32xf32, #tpu.memory_space<vmem>>, vector<8x32xf32>
    tpu.vector_store %arg17[%c0_49, %c0_50], %130 {strides = array<i32>} : memref<8x32xf32, #tpu.memory_space<vmem>>, vector<8x32xf32>,
    return
  }
  func.func @transform_0(%arg0: i32) -> (i32, i32) {
    %c0_i32 = arith.constant 0 : i32
    %c0_i32_0 = arith.constant 0 : i32
    return %arg0, %c0_i32 : i32, i32
  }
  func.func @transform_1(%arg0: i32) -> (i32, i32, i32) {
    %c0_i32 = arith.constant 0 : i32
    %c0_i32_0 = arith.constant 0 : i32
    %c0_i32_1 = arith.constant 0 : i32
    return %arg0, %c0_i32, %c0_i32_0 : i32, i32, i32
  }
  func.func @transform_2(%arg0: i32) -> (i32, i32) {
    %c0_i32 = arith.constant 0 : i32
    %c0_i32_0 = arith.constant 0 : i32
    %c0_i32_1 = arith.constant 0 : i32
    return %c0_i32, %c0_i32_0 : i32, i32
  }
  func.func @transform_3(%arg0: i32) -> (i32, i32) {
    %c0_i32 = arith.constant 0 : i32
    %c0_i32_0 = arith.constant 0 : i32
    %c0_i32_1 = arith.constant 0 : i32
    return %c0_i32, %c0_i32_0 : i32, i32
  }
  func.func @transform_4(%arg0: i32) -> (i32, i32) {
    %c0_i32 = arith.constant 0 : i32
    %c0_i32_0 = arith.constant 0 : i32
    %c0_i32_1 = arith.constant 0 : i32
    return %c0_i32, %c0_i32_0 : i32, i32
  }
  func.func @transform_5(%arg0: i32) -> (i32, i32) {
    %c0_i32 = arith.constant 0 : i32
    %c0_i32_0 = arith.constant 0 : i32
    %c0_i32_1 = arith.constant 0 : i32
    return %c0_i32, %c0_i32_0 : i32, i32
  }
  func.func @transform_6(%arg0: i32) -> (i32, i32) {
    %c0_i32 = arith.constant 0 : i32
    %c0_i32_0 = arith.constant 0 : i32
    %c0_i32_1 = arith.constant 0 : i32
    return %c0_i32, %c0_i32_0 : i32, i32
  }
  func.func @transform_7(%arg0: i32) -> (i32, i32) {
    %c0_i32 = arith.constant 0 : i32
    %c0_i32_0 = arith.constant 0 : i32
    %c0_i32_1 = arith.constant 0 : i32
    return %c0_i32, %c0_i32_0 : i32, i32
  }
  func.func @transform_8(%arg0: i32) -> (i32, i32) {
    %c0_i32 = arith.constant 0 : i32
    %c0_i32_0 = arith.constant 0 : i32
    %c0_i32_1 = arith.constant 0 : i32
    return %c0_i32, %c0_i32_0 : i32, i32
  }
  func.func @transform_9(%arg0: i32) -> (i32, i32) {
    %c0_i32 = arith.constant 0 : i32
    %c0_i32_0 = arith.constant 0 : i32
    %c0_i32_1 = arith.constant 0 : i32
    return %c0_i32, %c0_i32_0 : i32, i32
  }
  func.func @transform_10(%arg0: i32) -> (i32, i32) {
    %c0_i32 = arith.constant 0 : i32
    %c0_i32_0 = arith.constant 0 : i32
    %c0_i32_1 = arith.constant 0 : i32
    return %c0_i32, %c0_i32_0 : i32, i32
  }
  func.func @transform_11(%arg0: i32) -> (i32, i32) {
    %c0_i32 = arith.constant 0 : i32
    %c0_i32_0 = arith.constant 0 : i32
    %c0_i32_1 = arith.constant 0 : i32
    return %c0_i32, %c0_i32_0 : i32, i32
  }
  func.func @transform_12(%arg0: i32) -> (i32, i32) {
    %c0_i32 = arith.constant 0 : i32
    %c0_i32_0 = arith.constant 0 : i32
    %c0_i32_1 = arith.constant 0 : i32
    return %c0_i32, %c0_i32_0 : i32, i32
  }
  func.func @transform_13(%arg0: i32) -> (i32, i32) {
    %c0_i32 = arith.constant 0 : i32
    %c0_i32_0 = arith.constant 0 : i32
    %c0_i32_1 = arith.constant 0 : i32
    return %c0_i32, %c0_i32_0 : i32, i32
  }
  func.func @transform_14(%arg0: i32) -> (i32, i32) {
    %c0_i32 = arith.constant 0 : i32
    %c0_i32_0 = arith.constant 0 : i32
    %c0_i32_1 = arith.constant 0 : i32
    return %c0_i32, %c0_i32_0 : i32, i32
  }
  func.func @transform_15(%arg0: i32) -> (i32, i32) {
    %c0_i32 = arith.constant 0 : i32
    %c0_i32_0 = arith.constant 0 : i32
    %c0_i32_1 = arith.constant 0 : i32
    return %c0_i32, %c0_i32_0 : i32, i32
  }
  func.func @transform_16(%arg0: i32) -> (i32, i32) {
    %c0_i32 = arith.constant 0 : i32
    %c0_i32_0 = arith.constant 0 : i32
    return %arg0, %c0_i32 : i32, i32
  }
}

module attributes {stable_mosaic.version = 11 : i64} {
  func.func @_mlm_head_loss_kernel(%arg0: i32, %arg1: memref<16x32xf32, #tpu.memory_space<vmem>>, %arg2: memref<32x32xbf16, #tpu.memory_space<vmem>>, %arg3: memref<1x32xf32, #tpu.memory_space<vmem>>, %arg4: memref<1x32xf32, #tpu.memory_space<vmem>>, %arg5: memref<1x32xf32, #tpu.memory_space<vmem>>, %arg6: memref<32x128xbf16, #tpu.memory_space<vmem>>, %arg7: memref<1x128xf32, #tpu.memory_space<vmem>>, %arg8: memref<16x1xi32, #tpu.memory_space<vmem>>, %arg9: memref<1x1xf32, #tpu.memory_space<vmem>>, %arg10: memref<16x32xbf16, #tpu.memory_space<vmem>>, %arg11: memref<16x1xf32, #tpu.memory_space<vmem>>, %arg12: memref<16x1xf32, #tpu.memory_space<vmem>>, %arg13: memref<16x1xf32, #tpu.memory_space<vmem>>) attributes {dimension_semantics = [#tpu.dimension_semantics<arbitrary>], iteration_bounds = array<i64: 1>, scalar_prefetch = 0 : i64, scratch_operands = 4 : i64, tpu.core_type = #tpu.core_type<tc>, window_params = [{pipeline_mode = #tpu.pipeline_mode<synchronous>, transform_indices = @transform_0, window_bounds = array<i64: 16, 32>}, {pipeline_mode = #tpu.pipeline_mode<synchronous>, transform_indices = @transform_1, window_bounds = array<i64: 32, 32>}, {pipeline_mode = #tpu.pipeline_mode<synchronous>, transform_indices = @transform_2, window_bounds = array<i64: 1, 32>}, {pipeline_mode = #tpu.pipeline_mode<synchronous>, transform_indices = @transform_3, window_bounds = array<i64: 1, 32>}, {pipeline_mode = #tpu.pipeline_mode<synchronous>, transform_indices = @transform_4, window_bounds = array<i64: 1, 32>}, {transform_indices = @transform_5, window_bounds = array<i64: 32, 128>}, {transform_indices = @transform_6, window_bounds = array<i64: 1, 128>}, {pipeline_mode = #tpu.pipeline_mode<synchronous>, transform_indices = @transform_7, window_bounds = array<i64: 16, 1>}, {pipeline_mode = #tpu.pipeline_mode<synchronous>, transform_indices = @transform_8, window_bounds = array<i64: 1, 1>}]} {
    %c0_i32 = arith.constant 0 : i32
    %0 = arith.cmpi eq, %arg0, %c0_i32 : i32
    %1 = arith.extui %0 : i1 to i32
    %c0_i32_0 = arith.constant 0 : i32
    %2 = arith.cmpi ne, %1, %c0_i32_0 : i32
    scf.if %2 {
      %c0_27 = arith.constant 0 : index
      %c0_28 = arith.constant 0 : index
      %44 = vector.load %arg1[%c0_27, %c0_28] : memref<16x32xf32, #tpu.memory_space<vmem>>, vector<16x32xf32>
      %45 = arith.truncf %44 : vector<16x32xf32> to vector<16x32xbf16>
      %c0_29 = arith.constant 0 : index
      %c0_30 = arith.constant 0 : index
      %46 = vector.load %arg2[%c0_29, %c0_30] : memref<32x32xbf16, #tpu.memory_space<vmem>>, vector<32x32xbf16>
      %cst_31 = arith.constant dense<0.000000e+00> : vector<16x32xf32>
      %47 = tpu.matmul %45, %46, %cst_31 {dimension_numbers = #tpu.dot_dimension_numbers<[1], [0], [0], [1], [0, 0, 1, 1], [], []>} : vector<16x32xbf16>, vector<32x32xbf16>, vector<16x32xf32> -> vector<16x32xf32>
      %c0_32 = arith.constant 0 : index
      %c0_33 = arith.constant 0 : index
      %48 = vector.load %arg3[%c0_32, %c0_33] : memref<1x32xf32, #tpu.memory_space<vmem>>, vector<1x32xf32>
      %49 = vector.broadcast %48 : vector<1x32xf32> to vector<16x32xf32>
      %50 = arith.addf %47, %49 : vector<16x32xf32>
      %cst_34 = arith.constant 5.000000e-01 : f32
      %51 = vector.broadcast %cst_34 : f32 to vector<16x32xf32>
      %52 = arith.mulf %51, %50 : vector<16x32xf32>
      %cst_35 = arith.constant 0.707106769 : f32
      %53 = vector.broadcast %cst_35 : f32 to vector<16x32xf32>
      %54 = arith.mulf %50, %53 : vector<16x32xf32>
      %55 = math.erf %54 : vector<16x32xf32>
      %cst_36 = arith.constant 1.000000e+00 : f32
      %56 = vector.broadcast %cst_36 : f32 to vector<16x32xf32>
      %57 = arith.addf %56, %55 : vector<16x32xf32>
      %58 = arith.mulf %52, %57 : vector<16x32xf32>
      %c0_37 = arith.constant 0 : index
      %c0_38 = arith.constant 0 : index
      %59 = vector.load %arg4[%c0_37, %c0_38] : memref<1x32xf32, #tpu.memory_space<vmem>>, vector<1x32xf32>
      %c0_39 = arith.constant 0 : index
      %c0_40 = arith.constant 0 : index
      %60 = vector.load %arg5[%c0_39, %c0_40] : memref<1x32xf32, #tpu.memory_space<vmem>>, vector<1x32xf32>
      %cst_41 = arith.constant dense<0.000000e+00> : vector<16xf32>
      %61 = vector.multi_reduction <add>, %58, %cst_41 [1] : vector<16x32xf32> to vector<16xf32>
      %62 = vector.shape_cast %61 : vector<16xf32> to vector<16x1xf32>
      %cst_42 = arith.constant 3.200000e+01 : f32
      %63 = vector.broadcast %cst_42 : f32 to vector<16x1xf32>
      %64 = arith.divf %62, %63 : vector<16x1xf32>
      %65 = vector.broadcast %64 : vector<16x1xf32> to vector<16x32xf32>
      %66 = arith.subf %58, %65 : vector<16x32xf32>
      %67 = vector.broadcast %64 : vector<16x1xf32> to vector<16x32xf32>
      %68 = arith.subf %58, %67 : vector<16x32xf32>
      %69 = arith.mulf %66, %68 : vector<16x32xf32>
      %cst_43 = arith.constant dense<0.000000e+00> : vector<16xf32>
      %70 = vector.multi_reduction <add>, %69, %cst_43 [1] : vector<16x32xf32> to vector<16xf32>
      %71 = vector.shape_cast %70 : vector<16xf32> to vector<16x1xf32>
      %cst_44 = arith.constant 3.200000e+01 : f32
      %72 = vector.broadcast %cst_44 : f32 to vector<16x1xf32>
      %73 = arith.divf %71, %72 : vector<16x1xf32>
      %74 = vector.broadcast %64 : vector<16x1xf32> to vector<16x32xf32>
      %75 = arith.subf %58, %74 : vector<16x32xf32>
      %cst_45 = arith.constant 9.99999996E-13 : f32
      %76 = vector.broadcast %cst_45 : f32 to vector<16x1xf32>
      %77 = arith.addf %73, %76 : vector<16x1xf32>
      %78 = math.rsqrt %77 : vector<16x1xf32>
      %79 = vector.broadcast %78 : vector<16x1xf32> to vector<16x32xf32>
      %80 = arith.mulf %75, %79 : vector<16x32xf32>
      %81 = vector.broadcast %59 : vector<1x32xf32> to vector<16x32xf32>
      %82 = arith.mulf %80, %81 : vector<16x32xf32>
      %83 = vector.broadcast %60 : vector<1x32xf32> to vector<16x32xf32>
      %84 = arith.addf %82, %83 : vector<16x32xf32>
      %85 = arith.truncf %84 : vector<16x32xf32> to vector<16x32xbf16>
      %c0_46 = arith.constant 0 : index
      %c0_47 = arith.constant 0 : index
      %86 = vector.load %arg10[%c0_46, %c0_47] : memref<16x32xbf16, #tpu.memory_space<vmem>>, vector<16x32xbf16>
      tpu.vector_store %arg10[%c0_46, %c0_47], %85 {strides = array<i32>} : memref<16x32xbf16, #tpu.memory_space<vmem>>, vector<16x32xbf16>,
      %cst_48 = arith.constant 0xFF800000 : f32
      %87 = vector.broadcast %cst_48 : f32 to vector<16x1xf32>
      %c0_49 = arith.constant 0 : index
      %c0_50 = arith.constant 0 : index
      %88 = vector.load %arg11[%c0_49, %c0_50] : memref<16x1xf32, #tpu.memory_space<vmem>>, vector<16x1xf32>
      tpu.vector_store %arg11[%c0_49, %c0_50], %87 {strides = array<i32>} : memref<16x1xf32, #tpu.memory_space<vmem>>, vector<16x1xf32>,
      %cst_51 = arith.constant 0.000000e+00 : f32
      %89 = vector.broadcast %cst_51 : f32 to vector<16x1xf32>
      %c0_52 = arith.constant 0 : index
      %c0_53 = arith.constant 0 : index
      %90 = vector.load %arg12[%c0_52, %c0_53] : memref<16x1xf32, #tpu.memory_space<vmem>>, vector<16x1xf32>
      tpu.vector_store %arg12[%c0_52, %c0_53], %89 {strides = array<i32>} : memref<16x1xf32, #tpu.memory_space<vmem>>, vector<16x1xf32>,
      %cst_54 = arith.constant 0.000000e+00 : f32
      %91 = vector.broadcast %cst_54 : f32 to vector<16x1xf32>
      %c0_55 = arith.constant 0 : index
      %c0_56 = arith.constant 0 : index
      %92 = vector.load %arg13[%c0_55, %c0_56] : memref<16x1xf32, #tpu.memory_space<vmem>>, vector<16x1xf32>
      tpu.vector_store %arg13[%c0_55, %c0_56], %91 {strides = array<i32>} : memref<16x1xf32, #tpu.memory_space<vmem>>, vector<16x1xf32>,
    } else {
    }
    %c0 = arith.constant 0 : index
    %c0_1 = arith.constant 0 : index
    %3 = vector.load %arg10[%c0, %c0_1] : memref<16x32xbf16, #tpu.memory_space<vmem>>, vector<16x32xbf16>
    %c0_2 = arith.constant 0 : index
    %c0_3 = arith.constant 0 : index
    %4 = vector.load %arg6[%c0_2, %c0_3] : memref<32x128xbf16, #tpu.memory_space<vmem>>, vector<32x128xbf16>
    %cst = arith.constant dense<0.000000e+00> : vector<16x128xf32>
    %5 = tpu.matmul %3, %4, %cst {dimension_numbers = #tpu.dot_dimension_numbers<[1], [0], [0], [1], [0, 0, 1, 1], [], []>} : vector<16x32xbf16>, vector<32x128xbf16>, vector<16x128xf32> -> vector<16x128xf32>
    %c0_4 = arith.constant 0 : index
    %c0_5 = arith.constant 0 : index
    %6 = vector.load %arg7[%c0_4, %c0_5] : memref<1x128xf32, #tpu.memory_space<vmem>>, vector<1x128xf32>
    %7 = vector.broadcast %6 : vector<1x128xf32> to vector<16x128xf32>
    %8 = arith.addf %5, %7 : vector<16x128xf32>
    %c0_6 = arith.constant 0 : index
    %c0_7 = arith.constant 0 : index
    %9 = vector.load %arg8[%c0_6, %c0_7] : memref<16x1xi32, #tpu.memory_space<vmem>>, vector<16x1xi32>
    %10 = tpu.iota {dimensions = array<i32: 1>} : vector<16x128xi32>
    %c128_i32 = arith.constant 128 : i32
    %11 = arith.muli %arg0, %c128_i32 : i32
    %12 = vector.broadcast %11 : i32 to vector<16x128xi32>
    %13 = arith.addi %10, %12 : vector<16x128xi32>
    %14 = vector.broadcast %9 : vector<16x1xi32> to vector<16x128xi32>
    %15 = arith.cmpi eq, %13, %14 : vector<16x128xi32>
    %16 = arith.extui %15 : vector<16x128xi1> to vector<16x128xi32>
    %17 = arith.sitofp %16 : vector<16x128xi32> to vector<16x128xf32>
    %c0_8 = arith.constant 0 : index
    %c0_9 = arith.constant 0 : index
    %18 = vector.load %arg13[%c0_8, %c0_9] : memref<16x1xf32, #tpu.memory_space<vmem>>, vector<16x1xf32>
    %19 = arith.mulf %17, %8 : vector<16x128xf32>
    %cst_10 = arith.constant dense<0.000000e+00> : vector<16xf32>
    %20 = vector.multi_reduction <add>, %19, %cst_10 [1] : vector<16x128xf32> to vector<16xf32>
    %21 = vector.shape_cast %20 : vector<16xf32> to vector<16x1xf32>
    %22 = arith.addf %18, %21 : vector<16x1xf32>
    %c0_11 = arith.constant 0 : index
    %c0_12 = arith.constant 0 : index
    %23 = vector.load %arg13[%c0_11, %c0_12] : memref<16x1xf32, #tpu.memory_space<vmem>>, vector<16x1xf32>
    tpu.vector_store %arg13[%c0_11, %c0_12], %22 {strides = array<i32>} : memref<16x1xf32, #tpu.memory_space<vmem>>, vector<16x1xf32>,
    %c0_13 = arith.constant 0 : index
    %c0_14 = arith.constant 0 : index
    %24 = vector.load %arg11[%c0_13, %c0_14] : memref<16x1xf32, #tpu.memory_space<vmem>>, vector<16x1xf32>
    %cst_15 = arith.constant dense<0xFF800000> : vector<16xf32>
    %25 = vector.multi_reduction <maximumf>, %8, %cst_15 [1] : vector<16x128xf32> to vector<16xf32>
    %26 = vector.shape_cast %25 : vector<16xf32> to vector<16x1xf32>
    %27 = arith.maximumf %24, %26 : vector<16x1xf32>
    %c0_16 = arith.constant 0 : index
    %c0_17 = arith.constant 0 : index
    %28 = vector.load %arg12[%c0_16, %c0_17] : memref<16x1xf32, #tpu.memory_space<vmem>>, vector<16x1xf32>
    %c0_18 = arith.constant 0 : index
    %c0_19 = arith.constant 0 : index
    %29 = vector.load %arg11[%c0_18, %c0_19] : memref<16x1xf32, #tpu.memory_space<vmem>>, vector<16x1xf32>
    %30 = arith.subf %29, %27 : vector<16x1xf32>
    %31 = math.exp %30 : vector<16x1xf32>
    %32 = arith.mulf %28, %31 : vector<16x1xf32>
    %33 = vector.broadcast %27 : vector<16x1xf32> to vector<16x128xf32>
    %34 = arith.subf %8, %33 : vector<16x128xf32>
    %35 = math.exp %34 : vector<16x128xf32>
    %cst_20 = arith.constant dense<0.000000e+00> : vector<16xf32>
    %36 = vector.multi_reduction <add>, %35, %cst_20 [1] : vector<16x128xf32> to vector<16xf32>
    %37 = vector.shape_cast %36 : vector<16xf32> to vector<16x1xf32>
    %38 = arith.addf %32, %37 : vector<16x1xf32>
    %c0_21 = arith.constant 0 : index
    %c0_22 = arith.constant 0 : index
    %39 = vector.load %arg12[%c0_21, %c0_22] : memref<16x1xf32, #tpu.memory_space<vmem>>, vector<16x1xf32>
    tpu.vector_store %arg12[%c0_21, %c0_22], %38 {strides = array<i32>} : memref<16x1xf32, #tpu.memory_space<vmem>>, vector<16x1xf32>,
    %c0_23 = arith.constant 0 : index
    %c0_24 = arith.constant 0 : index
    %40 = vector.load %arg11[%c0_23, %c0_24] : memref<16x1xf32, #tpu.memory_space<vmem>>, vector<16x1xf32>
    tpu.vector_store %arg11[%c0_23, %c0_24], %27 {strides = array<i32>} : memref<16x1xf32, #tpu.memory_space<vmem>>, vector<16x1xf32>,
    %c0_i32_25 = arith.constant 0 : i32
    %41 = arith.cmpi eq, %arg0, %c0_i32_25 : i32
    %42 = arith.extui %41 : i1 to i32
    %c0_i32_26 = arith.constant 0 : i32
    %43 = arith.cmpi ne, %42, %c0_i32_26 : i32
    scf.if %43 {
      %c0_27 = arith.constant 0 : index
      %c0_28 = arith.constant 0 : index
      %44 = vector.load %arg11[%c0_27, %c0_28] : memref<16x1xf32, #tpu.memory_space<vmem>>, vector<16x1xf32>
      %c0_29 = arith.constant 0 : index
      %c0_30 = arith.constant 0 : index
      %45 = vector.load %arg12[%c0_29, %c0_30] : memref<16x1xf32, #tpu.memory_space<vmem>>, vector<16x1xf32>
      %46 = math.log %45 : vector<16x1xf32>
      %47 = arith.addf %44, %46 : vector<16x1xf32>
      %c0_i32_31 = arith.constant 0 : i32
      %48 = vector.broadcast %c0_i32_31 : i32 to vector<16x1xi32>
      %49 = arith.cmpi sge, %9, %48 : vector<16x1xi32>
      %50 = arith.extui %49 : vector<16x1xi1> to vector<16x1xi32>
      %51 = arith.sitofp %50 : vector<16x1xi32> to vector<16x1xf32>
      %c0_32 = arith.constant 0 : index
      %c0_33 = arith.constant 0 : index
      %52 = vector.load %arg13[%c0_32, %c0_33] : memref<16x1xf32, #tpu.memory_space<vmem>>, vector<16x1xf32>
      %53 = arith.subf %47, %52 : vector<16x1xf32>
      %54 = arith.mulf %53, %51 : vector<16x1xf32>
      %cst_34 = arith.constant dense<0.000000e+00> : vector<1xf32>
      %55 = vector.multi_reduction <add>, %54, %cst_34 [0] : vector<16x1xf32> to vector<1xf32>
      %56 = vector.shape_cast %55 : vector<1xf32> to vector<1x1xf32>
      %cst_35 = arith.constant dense<0.000000e+00> : vector<1xf32>
      %57 = vector.multi_reduction <add>, %51, %cst_35 [0] : vector<16x1xf32> to vector<1xf32>
      %58 = vector.shape_cast %57 : vector<1xf32> to vector<1x1xf32>
      %59 = arith.divf %56, %58 : vector<1x1xf32>
      %c0_36 = arith.constant 0 : index
      %c0_37 = arith.constant 0 : index
      %60 = vector.load %arg9[%c0_36, %c0_37] : memref<1x1xf32, #tpu.memory_space<vmem>>, vector<1x1xf32>
      tpu.vector_store %arg9[%c0_36, %c0_37], %59 {strides = array<i32>} : memref<1x1xf32, #tpu.memory_space<vmem>>, vector<1x1xf32>,
    } else {
    }
    return
  }
  func.func @transform_0(%arg0: i32) -> (i32, i32) {
    %c0_i32 = arith.constant 0 : i32
    %c0_i32_0 = arith.constant 0 : i32
    %c0_i32_1 = arith.constant 0 : i32
    return %c0_i32, %c0_i32_0 : i32, i32
  }
  func.func @transform_1(%arg0: i32) -> (i32, i32) {
    %c0_i32 = arith.constant 0 : i32
    %c0_i32_0 = arith.constant 0 : i32
    %c0_i32_1 = arith.constant 0 : i32
    return %c0_i32, %c0_i32_0 : i32, i32
  }
  func.func @transform_2(%arg0: i32) -> (i32, i32) {
    %c0_i32 = arith.constant 0 : i32
    %c0_i32_0 = arith.constant 0 : i32
    %c0_i32_1 = arith.constant 0 : i32
    return %c0_i32, %c0_i32_0 : i32, i32
  }
  func.func @transform_3(%arg0: i32) -> (i32, i32) {
    %c0_i32 = arith.constant 0 : i32
    %c0_i32_0 = arith.constant 0 : i32
    %c0_i32_1 = arith.constant 0 : i32
    return %c0_i32, %c0_i32_0 : i32, i32
  }
  func.func @transform_4(%arg0: i32) -> (i32, i32) {
    %c0_i32 = arith.constant 0 : i32
    %c0_i32_0 = arith.constant 0 : i32
    %c0_i32_1 = arith.constant 0 : i32
    return %c0_i32, %c0_i32_0 : i32, i32
  }
  func.func @transform_5(%arg0: i32) -> (i32, i32) {
    %c0_i32 = arith.constant 0 : i32
    %c0_i32_0 = arith.constant 0 : i32
    return %c0_i32, %arg0 : i32, i32
  }
  func.func @transform_6(%arg0: i32) -> (i32, i32) {
    %c0_i32 = arith.constant 0 : i32
    %c0_i32_0 = arith.constant 0 : i32
    return %c0_i32, %arg0 : i32, i32
  }
  func.func @transform_7(%arg0: i32) -> (i32, i32) {
    %c0_i32 = arith.constant 0 : i32
    %c0_i32_0 = arith.constant 0 : i32
    %c0_i32_1 = arith.constant 0 : i32
    return %c0_i32, %c0_i32_0 : i32, i32
  }
  func.func @transform_8(%arg0: i32) -> (i32, i32) {
    %c0_i32 = arith.constant 0 : i32
    %c0_i32_0 = arith.constant 0 : i32
    %c0_i32_1 = arith.constant 0 : i32
    return %c0_i32, %c0_i32_0 : i32, i32
  }
}

</mosaic_0001>

<bundles_post_ra>
// kernel: bert_lm_forward.5
= control target key start
LH: loop header
LB: loop body
LE: loop exit
PB: predicated region body
PF: predicated region fallthrough
CT: control target
= control target key end

     0   :  { %v469_v1 = vmov 0.0   ;;  %vm470_vm0 = vmmov 0   ;;  %s604_s0 = inlined_call_operand.vmem [shape: f32[16,32], index: 0, kind: input, shape index: {}]   ;;  %s605_s1 = inlined_call_operand.vmem [shape: bf16[32,32], index: 1, kind: input, shape index: {}]   ;;  %s606_s2 = inlined_call_operand.vmem [shape: f32[1,32], index: 2, kind: input, shape index: {}]   ;;  %s607_s3 = inlined_call_operand.vmem [shape: f32[1,32], index: 3, kind: input, shape index: {}]   ;;  %s608_s4 = inlined_call_operand.vmem [shape: f32[1,32], index: 4, kind: input, shape index: {}]   ;;  %s609_s5 = inlined_call_operand.vmem [shape: bf16[32,128], index: 5, kind: input, shape index: {}]   ;;  %s610_s6 = inlined_call_operand.vmem [shape: f32[1,128], index: 6, kind: input, shape index: {}]   ;;  %s611_s7 = inlined_call_operand.vmem [shape: s32[16,1], index: 7, kind: input, shape index: {}]   ;;  %s612_s8 = inlined_call_operand.hbm [shape: f32[1,1], index: 8, kind: output, shape index: {}]  }
   0x1   :  { %v419_v0 = vld [vmem:[%s605_s1] sm:$0xff]   ;;  %396 = vmatprep.subr.bf16.mxu0 %v469_v1  ;;  %404 = vmatprep.subr.bf16.mxu1 %v469_v1  ;;  %v420_v2 = vld [vmem:[%s605_s1 + $0x8] sm:$0xff]  }
   0x2   :  { %397 = vmatpush3.bf16.msra.mxu0 %v419_v0  ;;  %400 = vmatprep.mubr.msk.bf16.mxu0 %vm470_vm0, %v469_v1  ;;  %v35_v3 = vld [vmem:[%s604_s0] sm:$0xff]  ;;  %v36_v4 = vld [vmem:[%s604_s0 + $0x8] sm:$0xff] }
   0x3   :  { %398 = vmatprep.subr.bf16.mxu0 %v469_v1  ;;  %408 = vmatprep.mubr.msk.bf16.mxu1 %vm470_vm0, %v469_v1 }
   0x4   :  { %13 = vsyncpa [#allocation7], 0  ;;  %v37_v5 = vpack.c.bf16 %v36_v4, %v35_v3  ;;  %vm61_vm1 = vcmask 261120   ;;  %v376_v6 = vld [vmem:[%s606_s2] ss:$0 sm:$0xff]  ;;  %v422_v36 = vld [vmem:[%s609_s5 + $0x8] sm:$0xff]  }
   0x5   :  { %v421_v35 = vld [vmem:[%s609_s5] sm:$0xff]   ;;  %vm163_vm2 = vcmask 7168   ;;  %v471_v55 = vmov -inf   ;;  %v472_v63 = vmov 0   ;;  %vm360_vm7 = vcmask 0  }
   0x6   :  { %399 = vmatpush3.bf16.msra.mxu0 %v420_v2  ;;  %405 = vmatpush3.bf16.msra.mxu1 %v421_v35  ;;  %v380_v45 = vld [vmem:[%s607_s3] ss:$0 sm:$0xff]  ;;  %164 = vst.msk [vmem:[#allocation3] sm:$0xff] %vm163_vm2, %v471_v55  ;;  %165 = vst.msk [vmem:[#allocation3 + $0x8] sm:$0xff] %vm163_vm2, %v471_v55 }
   0x7   :  { %406 = vmatprep.subr.bf16.mxu1 %v469_v1  ;;  %v381_v49 = vld [vmem:[%s608_s4] ss:$0 sm:$0xff]  ;;  %166 = vst.msk [vmem:[#allocation4] sm:$0xff] %vm163_vm2, %v469_v1  ;;  %167 = vst.msk [vmem:[#allocation4 + $0x8] sm:$0xff] %vm163_vm2, %v469_v1  ;;  %417 = vset.pattern.permute.xlu0 %v472_v63 }
   0x8   :  { %168 = vst.msk [vmem:[#allocation5] sm:$0xff] %vm163_vm2, %v469_v1  ;;  %169 = vst.msk [vmem:[#allocation5 + $0x8] sm:$0xff] %vm163_vm2, %v469_v1  ;;  %v382_v56 = vld [vmem:[%s610_s6] ss:$0 sm:$0xff]  ;;  %418 = vset.pattern.permute.xlu1 %v472_v63 }
   0x9   :  { %401 = vmatmul.mubr.msk.bf16.vlgmr.msra.gmra.mrb[0].mxu0 %vm61_vm1, %v37_v5 }
   0xa   :  { %407 = vmatpush3.bf16.msra.mxu1 %v422_v36 }
   0xd   :  { %v271_v0 = vld [vmem:[#allocation3] sm:$0xff]  ;;  %v272_v3 = vld [vmem:[#allocation3 + $0x8] sm:$0xff] }
  0xdc   :  { %v99_v7 = vpop.f32.mrb[0].mxu0 }
  0xdd   :  { %v100_v8 = vadd.f32 %v376_v6, %v99_v7  ;;  %v402_v9 = vpop.f32.mrb[1].mxu0 }
  0xde   :  { %v102_v10 = vpop.f32.mrb[2].mxu0  ;;  %v239_v9 = vld [vmem:[%s611_s7] sm:$0xff] }
  0xdf   :  { %v108_v11 = vmul.f32 0.70710677, %v100_v8  ;;  %v103_v12 = vadd.f32 %v376_v6, %v102_v10  ;;  %v403_v13 = vpop.f32.mrb[3].mxu0  ;;  %v106_v16 = vmul.f32 0.5, %v100_v8  ;;  %v240_v10 = vld [vmem:[%s611_s7 + $0x8] sm:$0xff]  ;;  %vm328_vm5 = vcmp.ge.s32.totalorder %v239_v9, 0 }
  0xe0   :  { %vm329_vm6 = vcmp.ge.s32.totalorder %v240_v10, 0  ;;  %s473_s7 = smov [#allocation6]  }
  0xe1   :  { %423 = verf.f32 %v108_v11  ;;  %v109_v14 = vmul.f32 0.70710677, %v103_v12  ;;  %v107_v19 = vmul.f32 0.5, %v103_v12  ;;  %v389_v35 = vsel %vm329_vm6, 1.0, %v469_v1  ;;  %s368_s22 = sshll.u32 %s473_s7, 4  ;;  %s369_s22 = int_to_ptr.vmem [resolvable:$true] %s368_s22 }
  0xe2   :  { %s445_s23 = scalar_lea.vmem %s369_s22, 16  ;;  %s449_s24 = scalar_lea.vmem %s369_s22, 32 }
  0xe3   :  { %425 = verf.f32 %v109_v14  ;;  %p446_p0 = scmp.ne.s32.totalorder %s369_s22, %s445_s23  ;;  %p450_p1 = scmp.lt.s32.totalorder %s369_s22, %s369_s22 }
  0xe4   :  { %p451_p2 = scmp.lt.s32.totalorder %s449_s24, %s445_s23 }
  0xe6   :  { %p452_p3 = por %p451_p2, %p450_p1 }
  0xe8   :  { %p453_p4 = pnand %p452_p3, %p446_p0 }
  0xeb   :  { %v424_v15 = vpop.eup %423 }
  0xec   :  { %v112_v17 = vadd.f32 1.0, %v424_v15 }
  0xed   :  { %v426_v18 = vpop.eup %425 }
  0xee   :  { %v114_v20 = vmul.f32 %v112_v17, %v106_v16  ;;  %v113_v21 = vadd.f32 1.0, %v426_v18  ;;  %v241_v16 = vlaneseq }
  0xf0   :  { %v118_v22 = vsel %vm61_vm1, %v114_v20, 0.0  ;;  %v115_v23 = vmul.f32 %v113_v21, %v107_v19  ;;  %v242_v19 = vand.u32 127, %v241_v16 }
  0xf1   :  { %119 = vadd.xlane.f32.xlu0 %v118_v22 }
  0xf2   :  { %v121_v24 = vsel %vm61_vm1, %v115_v23, 0.0 }
  0xf5   :  { %122 = vadd.xlane.f32.xlu0 %v121_v24 }
 0x17e   :  { %v120_v25 = vpop.xlane.xlu0 %119 }
 0x17f   :  { %v125_v26 = vmul.f32 0.03125, %v120_v25 }
 0x181   :  { %v127_v27 = vsub.f32 %v114_v20, %v125_v26 }
 0x182   :  { %v123_v28 = vpop.xlane.xlu0 %122 }
 0x183   :  { %v126_v29 = vmul.f32 0.03125, %v123_v28  ;;  %v129_v30 = vmul.f32 %v127_v27, %v127_v27 }
 0x185   :  { %v128_v31 = vsub.f32 %v115_v23, %v126_v29  ;;  %v131_v32 = vsel %vm61_vm1, %v129_v30, 0.0  ;;  %v279_v30 = vld [vmem:[#allocation4] sm:$0xff] }
 0x186   :  { %132 = vadd.xlane.f32.xlu1 %v131_v32  ;;  %v280_v32 = vld [vmem:[#allocation4 + $0x8] sm:$0xff] }
 0x187   :  { %v130_v33 = vmul.f32 %v128_v31, %v128_v31 }
 0x189   :  { %v134_v34 = vsel %vm61_vm1, %v130_v33, 0.0 }
 0x18a   :  { %135 = vadd.xlane.f32.xlu1 %v134_v34  ;;  %v388_v34 = vsel %vm328_vm5, 1.0, %v469_v1 }
 0x213   :  { %v133_v37 = vpop.xlane.xlu1 %132 }
 0x214   :  { %v137_v38 = vmul.f32 0.03125, %v133_v37 }
 0x216   :  { %v139_v39 = vadd.f32 1e-12, %v137_v38 }
 0x217   :  { %v136_v40 = vpop.xlane.xlu1 %135 }
 0x218   :  { %427 = vrsqrt.f32 %v139_v39  ;;  %v138_v41 = vmul.f32 0.03125, %v136_v40  ;;  %v258_v40 = vld [vmem:[#allocation5] sm:$0xff] }
 0x21a   :  { %v140_v42 = vadd.f32 1e-12, %v138_v41  ;;  %v349_v41 = vsel %vm163_vm2, %v388_v34, 0.0 }
 0x21c   :  { %429 = vrsqrt.f32 %v140_v42  ;;  %v350_v42 = vsel %vm163_vm2, %v389_v35, 0.0 }
 0x222   :  { %v428_v43 = vpop.eup %427 }
 0x223   :  { %v143_v44 = vmul.f32 %v428_v43, %v127_v27 }
 0x225   :  { %v151_v47 = vmul.f32 %v380_v45, %v143_v44 }
 0x226   :  { %v430_v46 = vpop.eup %429 }
 0x227   :  { %v144_v48 = vmul.f32 %v430_v46, %v128_v31  ;;  %v159_v51 = vadd.f32 %v381_v49, %v151_v47  ;;  %v351_v46 = vadd.f32 %v350_v42, %v349_v41  ;;  %v259_v47 = vld [vmem:[#allocation5 + $0x8] sm:$0xff] }
 0x229   :  { %v152_v50 = vmul.f32 %v380_v45, %v144_v48 }
 0x22b   :  { %v160_v52 = vadd.f32 %v381_v49, %v152_v50  ;;  %v352_v49 = vrot.slane %v351_v46, 4 }
 0x22d   :  { %v161_v53 = vpack.c.bf16 %v160_v52, %v159_v51  ;;  %v353_v52 = vadd.f32 %v352_v49, %v351_v46 }
 0x22f   :  { %162 = vst.msk [vmem:[#allocation2] sm:$0xff] %vm61_vm1, %v161_v53  ;;  %v354_v53 = vrot.slane %v353_v52, 2 }
 0x231   :  { %v355_v55 = vadd.f32 %v354_v53, %v353_v52 }
 0x233   :  { %v356_v63 = vrot.slane %v355_v55, 1 }
 0x236   :  { %v170_v54 = vld [vmem:[#allocation2] sm:$0xff] }
 0x237   :  { %409 = vmatmul.mubr.msk.bf16.vlgmr.msra.gmra.mrb[0].mxu1 %vm61_vm1, %v170_v54 }
 0x30a   :  { %v232_v57 = vpop.f32.mrb[0].mxu1 }
 0x30b   :  { %v233_v58 = vadd.f32 %v382_v56, %v232_v57  ;;  %v410_v59 = vpop.f32.mrb[1].mxu1 }
 0x30c   :  { %v235_v60 = vpop.f32.mrb[2].mxu1 }
 0x30d   :  { %v236_v61 = vadd.f32 %v382_v56, %v235_v60  ;;  %273 = vmax.xlane.f32.xlu0 %v233_v58  ;;  %v411_v62 = vpop.f32.mrb[3].mxu1 }
 0x30f   :  { %275 = vmax.xlane.f32.xlu1 %v236_v61 }
 0x39a   :  { %v274_v2 = vpop.xlane.xlu0 %273 }
 0x39b   :  { %v277_v4 = vmax.f32 %v271_v0, %v274_v2 }
 0x39c   :  { %v276_v5 = vpop.xlane.xlu1 %275 }
 0x39d   :  { %v281_v6 = vsub.f32 %v271_v0, %v277_v4  ;;  %313 = vst.msk [vmem:[#allocation3] sm:$0xff] %vm163_vm2, %v277_v4  ;;  %v278_v7 = vmax.f32 %v272_v3, %v276_v5  ;;  %291 = vperm.xlu0 %417, %v277_v4  }
 0x39f   :  { %v282_v8 = vsub.f32 %v272_v3, %v278_v7  ;;  %314 = vst.msk [vmem:[#allocation3 + $0x8] sm:$0xff] %vm163_vm2, %v278_v7  ;;  %296 = vperm.xlu1 %418, %v278_v7   ;;  %v283_v27 = vmul.f32 1.442695, %v281_v6  ;;  %v357_v6 = vadd.f32 %v356_v63, %v355_v55 }
 0x3a1   :  { %v285_v28 = vmul.f32 1.442695, %v282_v8 }
 0x3a3   :  { %247 = vperm.xlu1 %418, %v239_v9  }
 0x3a7   :  { %250 = vperm.xlu1 %418, %v240_v10  }
 0x41c   :  { %v292_v11 = vpop.permute.xlu0 %291 }
 0x41d   :  { %v299_v12 = vsub.f32 %v233_v58, %v292_v11 }
 0x41e   :  { %v297_v13 = vpop.permute.xlu1 %296 }
 0x41f   :  { %v301_v14 = vmul.f32 1.442695, %v299_v12  ;;  %v300_v15 = vsub.f32 %v236_v61, %v297_v13 }
 0x421   :  { %431 = vpow2.f32 %v301_v14  ;;  %v303_v17 = vmul.f32 1.442695, %v300_v15 }
 0x422   :  { %v248_v18 = vpop.permute.xlu1 %247 }
 0x423   :  { %433 = vpow2.f32 %v303_v17  ;;  %vm252_vm3 = vcmp.eq.s32.totalorder %v242_v19, %v248_v18 }
 0x424   :  { %v386_v22 = vsel %vm252_vm3, 1.0, %v469_v1  ;;  %435 = vpow2.f32 %v283_v27 }
 0x425   :  { %v260_v24 = vmul.f32 %v386_v22, %v233_v58  ;;  %437 = vpow2.f32 %v285_v28  ;;  %v318_v58 = vld [vmem:[#allocation3] sm:$0xff] }
 0x426   :  { %v251_v20 = vpop.permute.xlu1 %250 }
 0x427   :  { %vm253_vm4 = vcmp.eq.s32.totalorder %v242_v19, %v251_v20 }
 0x428   :  { %v387_v25 = vsel %vm253_vm4, 1.0, %v469_v1 }
 0x429   :  { %v261_v26 = vmul.f32 %v387_v25, %v236_v61  ;;  %v319_v61 = vld [vmem:[#allocation3 + $0x8] sm:$0xff] }
 0x42b   :  { %v432_v21 = vpop.eup %431 }
 0x42c   :  { %305 = vadd.xlane.f32.xlu1 %v432_v21 }
 0x42d   :  { %v434_v23 = vpop.eup %433 }
 0x42e   :  { %307 = vadd.xlane.f32.xlu0 %v434_v23  ;;  %v436_v29 = vpop.eup %435 }
 0x42f   :  { %v438_v31 = vpop.eup %437  ;;  %v287_v33 = vmul.f32 %v436_v29, %v279_v30 }
 0x430   :  { %262 = vadd.xlane.f32.xlu1 %v260_v24  ;;  %v288_v38 = vmul.f32 %v438_v31, %v280_v32 }
 0x434   :  { %264 = vadd.xlane.f32.xlu1 %v261_v26 }
 0x4b9   :  { %v306_v36 = vpop.xlane.xlu1 %305 }
 0x4ba   :  { %v309_v37 = vadd.f32 %v306_v36, %v287_v33 }
 0x4bb   :  { %v308_v39 = vpop.xlane.xlu0 %307 }
 0x4bc   :  { %311 = vst.msk [vmem:[#allocation4] sm:$0xff] %vm163_vm2, %v309_v37  ;;  %v310_v43 = vadd.f32 %v308_v39, %v288_v38 }
 0x4bd   :  { %v263_v44 = vpop.xlane.xlu1 %262 }
 0x4be   :  { %312 = vst.msk [vmem:[#allocation4 + $0x8] sm:$0xff] %vm163_vm2, %v310_v43  ;;  %v266_v45 = vadd.f32 %v263_v44, %v258_v40 }
 0x4c0   :  { %269 = vst.msk [vmem:[#allocation5] sm:$0xff] %vm163_vm2, %v266_v45 }
 0x4c1   :  { %v265_v1 = vpop.xlane.xlu1 %264 }
 0x4c2   :  { %v267_v48 = vadd.f32 %v265_v1, %v259_v47 }
 0x4c3   :  { %v320_v50 = vld [vmem:[#allocation4] sm:$0xff] }
 0x4c4   :  { %270 = vst.msk [vmem:[#allocation5 + $0x8] sm:$0xff] %vm163_vm2, %v267_v48  ;;  %439 = vlog2.f32 %v320_v50 }
 0x4c5   :  { %v321_v51 = vld [vmem:[#allocation4 + $0x8] sm:$0xff] }
 0x4c6   :  { %441 = vlog2.f32 %v321_v51 }
 0x4c7   :  { %v334_v62 = vld [vmem:[#allocation5] sm:$0xff]  ;;  %443 = vrcp.f32 %v357_v6 }
 0x4cb   :  { %v335_v3 = vld [vmem:[#allocation5 + $0x8] sm:$0xff] }
 0x4ce   :  { %v440_v54 = vpop.eup %439 }
 0x4cf   :  { %v323_v56 = vmul.f32 0.6931472, %v440_v54 }
 0x4d0   :  { %v442_v57 = vpop.eup %441 }
 0x4d1   :  { %v325_v59 = vmul.f32 0.6931472, %v442_v57  ;;  %v326_v60 = vadd.f32 %v323_v56, %v318_v58  ;;  %v444_v16 = vpop.eup %443 }
 0x4d3   :  { %v327_v0 = vadd.f32 %v325_v59, %v319_v61  ;;  %v336_v2 = vsub.f32 %v326_v60, %v334_v62 }
 0x4d5   :  { %v337_v4 = vsub.f32 %v327_v0, %v335_v3  ;;  %v338_v5 = vmul.f32 %v388_v34, %v336_v2 }
 0x4d7   :  { %v339_v7 = vmul.f32 %v389_v35, %v337_v4  ;;  %v340_v8 = vsel %vm163_vm2, %v338_v5, 0.0 }
 0x4d9   :  { %v341_v9 = vsel %vm163_vm2, %v339_v7, 0.0 }
 0x4da   :  { %v342_v10 = vadd.f32 %v341_v9, %v340_v8 }
 0x4dc   :  { %v343_v11 = vrot.slane %v342_v10, 4 }
 0x4de   :  { %v344_v12 = vadd.f32 %v343_v11, %v342_v10 }
 0x4e0   :  { %v345_v13 = vrot.slane %v344_v12, 2 }
 0x4e2   :  { %v346_v14 = vadd.f32 %v345_v13, %v344_v12 }
 0x4e4   :  { %v347_v15 = vrot.slane %v346_v14, 1 }
 0x4e6   :  { %v348_v17 = vadd.f32 %v347_v15, %v346_v14 }
 0x4e8   :  { %v359_v18 = vmul.f32 %v444_v16, %v348_v17 }
 0x4ea   :  { %361 = vst.msk [vmem:[#allocation6] sm:$0x1] %vm360_vm7, %v359_v18 }
 0x4eb   :  { %456 = shalt.err (!%p453_p4)
}
 0x4ec   :  { %s457_s27 = scalar_lea.hbm %s612_s8, 16 }
 0x4ed   :  { %p458_p5 = scmp.ne.s32.totalorder %s612_s8, %s457_s27  ;;  %p461_p6 = scmp.lt.u32.totalorder %s457_s27, %s612_s8 }
 0x4ef   :  { %p463_p7 = pnand %p461_p6, %p458_p5 }
 0x4f1   :  { %466 = shalt.err (!%p463_p7)
}
 0x4f2   :  { %371 = dma.vmem_to_hbm [thread:$0]  %s369_s22, 16, %s612_s8, [#allocation7]  }
 0x4f3   :  { %467 = dma.done.wait [#allocation7], 16  }
 0x4f4   :  { %468 = vsyncadd [#allocation7], 4294967280 }
 0x4f5   :  { %375 = vsyncpa [#allocation7], 1 }

// kernel: bert_lm_forward.4
= control target key start
LH: loop header
LB: loop body
LE: loop exit
PB: predicated region body
PF: predicated region fallthrough
CT: control target
= control target key end

     0   :  { %s1443_s19 = smov 0   ;;  %s1583_s0 = inlined_call_operand.vmem [shape: f32[16,32], index: 0, kind: input, shape index: {}]   ;;  %s1584_s1 = inlined_call_operand.vmem [shape: f32[2,1,8], index: 1, kind: input, shape index: {}]   ;;  %s1585_s2 = inlined_call_operand.vmem [shape: f32[1,32], index: 2, kind: input, shape index: {}]   ;;  %s1586_s3 = inlined_call_operand.vmem [shape: f32[1,32], index: 3, kind: input, shape index: {}]   ;;  %s1587_s4 = inlined_call_operand.vmem [shape: bf16[32,96], index: 4, kind: input, shape index: {}]   ;;  %s1588_s5 = inlined_call_operand.vmem [shape: f32[1,96], index: 5, kind: input, shape index: {}]   ;;  %s1589_s6 = inlined_call_operand.vmem [shape: bf16[32,32], index: 6, kind: input, shape index: {}]   ;;  %s1590_s7 = inlined_call_operand.vmem [shape: f32[1,32], index: 7, kind: input, shape index: {}]   ;;  %s1591_s8 = inlined_call_operand.vmem [shape: f32[1,32], index: 8, kind: input, shape index: {}]   ;;  %s1592_s9 = inlined_call_operand.vmem [shape: f32[1,32], index: 9, kind: input, shape index: {}]   ;;  %s1593_s10 = inlined_call_operand.vmem [shape: bf16[32,64], index: 10, kind: input, shape index: {}]   ;;  %s1594_s11 = inlined_call_operand.vmem [shape: f32[1,64], index: 11, kind: input, shape index: {}]   ;;  %s1595_s12 = inlined_call_operand.vmem [shape: bf16[64,32], index: 12, kind: input, shape index: {}]   ;;  %s1596_s13 = inlined_call_operand.vmem [shape: f32[1,32], index: 13, kind: input, shape index: {}]   ;;  %s1597_s14 = inlined_call_operand.vmem [shape: f32[1,32], index: 14, kind: input, shape index: {}]   ;;  %s1598_s15 = inlined_call_operand.vmem [shape: f32[1,32], index: 15, kind: input, shape index: {}]   ;;  %s1599_s16 = inlined_call_operand.vmem [shape: f32[16,32], index: 16, kind: output, shape index: {}]  }
   0x1   :  { %1600 = sst [smem:[#allocation2_spill]] %s1583_s0 }
   0x2 LB: > { %s1188_s20 = sadd.s32 4294967295, %s1350_s19   ;;  %p1192_p0 = scmp.ge.s32.totalorder %s1350_s19, 1  ;;  %s1350_s19 = sphi %s1443_s19, %s26_s19  }
   0x3   : > { %p469_p1 = scmp.lt.s32.totalorder %s1350_s19, 3 }
   0x5   : > { %p470_p2 = pnand %p1192_p0, %p469_p1 }
   0x6   : > { %v1320_v0 = vld [vmem:[%s1587_s4] sm:$0xff] (!%p470_p2)   ;;  %v1352_v1 = vmov (!%p470_p2), 0.0   ;;  %v1321_v2 = vld [vmem:[%s1587_s4 + $0x8] sm:$0xff] (!%p470_p2)   ;;  %vm1353_vm0 = vmmov (!%p470_p2), 0   ;;  %p520_p3 = scmp.lt.s32.totalorder (!%p470_p2), %s1188_s20, 1  ;;  %s1601_s26 = sld [smem:[#allocation2_spill]] (!%p470_p2) }
   0x7   : > { %473 = sbr.rel (%p470_p2) target bundleno = 2474 (0x9aa), region = 84  ;;  %1246 = vmatprep.subr.bf16.mxu0 (!%p470_p2), %v1352_v1  ;;  %1254 = vmatprep.subr.bf16.mxu1 (!%p470_p2), %v1352_v1  ;;  %vm557_vm1 = vcmask (!%p470_p2), 261120   ;;  %v1195_v5 = vld [vmem:[%s1588_s5] ss:$0 sm:$0xff] (!%p470_p2)  ;;  %s1354_s29 = smov (!%p470_p2), 112   ;;  %vm619_vm2 = vcmask (!%p470_p2), 130048  }
   0x8   : > { %1247 = vmatpush3.bf16.msra.mxu0 (!%p470_p2), %v1320_v0  ;;  %1250 = vmatprep.mubr.msk.bf16.mxu0 (!%p470_p2), %vm1353_vm0, %v1352_v1  ;;  %s1355_s30 = smov (!%p470_p2), 96   ;;  %s1356_s17 = smov (!%p470_p2), 64   ;;  %vm740_vm3 = vcmask (!%p470_p2), 1043456   ;;  %vm714_vm4 = vcmask (!%p470_p2), 64512   ;;  %v1322_v49 = vld [vmem:[%s1589_s6] sm:$0xff] (!%p470_p2)   ;;  %v1323_v51 = vld [vmem:[%s1589_s6 + $0x8] sm:$0xff] (!%p470_p2)  }
   0x9   : > { %1248 = vmatprep.subr.bf16.mxu0 (!%p470_p2), %v1352_v1  ;;  %1256 = vmatprep.mubr.msk.bf16.mxu1 (!%p470_p2), %vm1353_vm0, %v1352_v1  ;;  %vm1051_vm5 = vcmask (!%p470_p2), 523264  }
   0xc   : > { %1249 = vmatpush3.bf16.msra.mxu0 (!%p470_p2), %v1321_v2 }
   0xd   : > { %1260 = vmatprep.subr.bf16.mxu0 (!%p470_p2), %v1352_v1 }
   0xe   : > { %s1603_s20 = smov (!%p520_p3, %s1188_s20), 1 }
   0xf   : > { %s1193_s23 = sshll.u32 %s1603_s20, 3  ;;  %s526_s21 = scalar_lea.vmem %s1584_s1, %s1603_s20 }
  0x10   : > { %s523_s27 = scalar_lea.vmem %s1601_s26, %s1193_s23  ;;  %v1199_v22 = vld [vmem:[%s526_s21] ss:$0 sm:$0xff]  ;;  %s1357_s26 = smov 16  }
  0x11   : > { %v1473_v3 = vld [vmem:[%s523_s27] sm:$0xff]  ;;  %s530_s27 = scalar_lea.vmem %s1599_s16, %s1193_s23 }
  0x12   : > { %v533_v4 = vpack.c.bf16 %v1473_v3, %v1473_v3 }
  0x14   : > { %1251 = vmatmul.mubr.msk.bf16.vlgmr.msra.gmra.mrb[0].mxu0 %vm557_vm1, %v533_v4 }
  0x15   : > { %1262 = vmatprep.mubr.msk.bf16.mxu0 %vm1353_vm0, %v1352_v1 }
  0xe7   : > { %v595_v6 = vpop.f32.mrb[0].mxu0 }
  0xe8   : > { %v596_v7 = vadd.f32 %v1195_v5, %v595_v6  ;;  %v1252_v8 = vpop.f32.mrb[1].mxu0  ;;  %v1204_v6 = vld [vmem:[%s1590_s7] ss:$0 sm:$0xff] }
  0xe9   : > { %v598_v9 = vpop.f32.mrb[2].mxu0 }
  0xea   : > { %v603_v10 = vpack.c.bf16 %v596_v7, %v596_v7  ;;  %v1253_v11 = vpop.f32.mrb[3].mxu0  ;;  %v601_v12 = vmul.f32 0.25, %v596_v7 }
  0xec   : > { %608 = vrot.lane.b32.xlu0 %v603_v10, %s1354_s29  ;;  %v602_v13 = vpack.c.bf16 %v601_v12, %v601_v12 }
  0xee   : > { %605 = vrot.lane.b32.xlu1 %v602_v13, %s1354_s29 }
  0xf2   : > { %617 = vrot.lane.b32.xlu1 %v603_v10, %s1355_s30 }
 0x15e   : > { %v609_v14 = vpop.permute.xlu0 %608 }
 0x15f   : > { %666 = vrot.lane.b32.xlu0 %v609_v14, %s1355_s30  ;;  %784 = vrot.lane.b32.xlu1 %v609_v14, %s1356_s17 }
 0x160   : > { %v606_v15 = vpop.permute.xlu1 %605 }
 0x164   : > { %v618_v16 = vpop.permute.xlu1 %617 }
 0x165   : > { %v624_v17 = vsel %vm619_vm2, %v618_v16, 0 }
 0x166   : > { %1255 = vmatpush3.bf16.xpose.msra.mxu1 %v624_v17 }
 0x167   : > { %1266 = vmatprep.subr.bf16.mxu1 %v1352_v1 }
 0x16d   : > { %1257 = vmatmul.mubr.msk.bf16.vlgmr.msra.gmra.mrb[0].mxu1 %vm619_vm2, %v602_v13 }
 0x16e   : > { %1268 = vmatprep.mubr.msk.bf16.mxu1 %vm1353_vm0, %v1352_v1 }
 0x1d1   : > { %v667_v18 = vpop.permute.xlu0 %666  ;;  %v785_v20 = vpop.permute.xlu1 %784 }
 0x1d2   : > { %v672_v19 = vsel %vm619_vm2, %v667_v18, 0  ;;  %v790_v21 = vsel %vm740_vm3, %v785_v20, 0 }
 0x1d3   : > { %1261 = vmatpush3.bf16.xpose.msra.mxu0 %v672_v19  ;;  %v1324_v19 = vld [vmem:[%s1593_s10] sm:$0xff]  }
 0x1d4   : > { %1272 = vmatprep.subr.bf16.mxu0 %v1352_v1 }
 0x1da   : > { %1263 = vmatmul.mubr.msk.bf16.vlgmr.msra.gmra.mrb[4].mxu0 %vm619_vm2, %v606_v15 }
 0x1db   : > { %1273 = vmatpush3.bf16.msra.mxu0 %v790_v21  ;;  %1274 = vmatprep.mubr.msk.bf16.mxu0 %vm1353_vm0, %v1352_v1 }
 0x1dc   : > { %1286 = vmatprep.subr.bf16.mxu0 %v1352_v1 }
 0x240   : > { %v660_v23 = vpop.f32.mrb[0].mxu1 }
 0x241   : > { %v661_v24 = vadd.f32 %v1199_v22, %v660_v23  ;;  %v1258_v25 = vpop.f32.mrb[1].mxu1 }
 0x242   : > { %v663_v26 = vpop.f32.mrb[2].mxu1 }
 0x243   : > { %v1259_v27 = vpop.f32.mrb[3].mxu1  ;;  %v715_v28 = vsel %vm714_vm4, %v661_v24, -inf  ;;  %v1209_v26 = vld [vmem:[%s1592_s9] ss:$0 sm:$0xff] }
 0x244   : > { %716 = vmax.xlane.f32.xlu1 %v715_v28 }
 0x2ad   : > { %v708_v29 = vpop.f32.mrb[4].mxu0 }
 0x2ae   : > { %v709_v30 = vadd.f32 %v1199_v22, %v708_v29  ;;  %v1264_v31 = vpop.f32.mrb[5].mxu0 }
 0x2af   : > { %v711_v32 = vpop.f32.mrb[6].mxu0  ;;  %v1327_v31 = vld [vmem:[%s1595_s12 + $0x8] sm:$0xff]  }
 0x2b0   : > { %v1265_v33 = vpop.f32.mrb[7].mxu0  ;;  %v718_v34 = vsel %vm714_vm4, %v709_v30, -inf  ;;  %v1328_v32 = vld [vmem:[%s1595_s12 + $0x10] sm:$0xff]  }
 0x2b1   : > { %719 = vmax.xlane.f32.xlu0 %v718_v34  ;;  %v1329_v33 = vld [vmem:[%s1595_s12 + $0x18] sm:$0xff]   ;;  %v1210_v34 = vld [vmem:[%s1594_s11] ss:$0 sm:$0xff] }
 0x2c7   : > { %735 = vrot.lane.b32.xlu0 %v603_v10, %s1356_s17 }
 0x2d1   : > { %v717_v35 = vpop.xlane.xlu1 %716 }
 0x2d2   : > { %v721_v36 = vsub.f32 %v661_v24, %v717_v35  ;;  %v1208_v24 = vld [vmem:[%s1591_s8] ss:$0 sm:$0xff] }
 0x2d4   : > { %v723_v37 = vmul.f32 1.442695, %v721_v36 }
 0x2d6   : > { %1330 = vpow2.f32 %v723_v37 }
 0x2e0   : > { %v1331_v41 = vpop.eup %1330 }
 0x2e1   : > { %v733_v44 = vpack.c.bf16 %v1331_v41, %v1331_v41  ;;  %v727_v48 = vsel %vm714_vm4, %v1331_v41, 0.0 }
 0x33e   : > { %v720_v38 = vpop.xlane.xlu0 %719 }
 0x33f   : > { %v722_v39 = vsub.f32 %v709_v30, %v720_v38  ;;  %v1326_v30 = vld [vmem:[%s1595_s12] sm:$0xff]  }
 0x341   : > { %v725_v40 = vmul.f32 1.442695, %v722_v39 }
 0x342   : > { %v736_v42 = vpop.permute.xlu0 %735 }
 0x343   : > { %1332 = vpow2.f32 %v725_v40  ;;  %v742_v43 = vsel %vm740_vm3, %v736_v42, 0 }
 0x344   : > { %1267 = vmatpush3.bf16.msra.mxu1 %v742_v43 }
 0x345   : > { %1278 = vmatprep.subr.bf16.mxu1 %v1352_v1 }
 0x347   : > { %1269 = vmatmul.mubr.msk.bf16.vlgmr.msra.gmra.mrb[4].mxu1 %vm714_vm4, %v733_v44 }
 0x348   : > { %1282 = vmatprep.mubr.msk.bf16.mxu1 %vm1353_vm0, %v1352_v1  ;;  %1279 = vmatpush3.bf16.msra.mxu1 %v1322_v49 }
 0x349   : > { %1280 = vmatprep.subr.bf16.mxu1 %v1352_v1 }
 0x34c   : > { %1281 = vmatpush3.bf16.msra.mxu1 %v1323_v51 }
 0x34d   : > { %v1333_v45 = vpop.eup %1332  ;;  %1294 = vmatprep.subr.bf16.mxu1 %v1352_v1 }
 0x34e   : > { %v730_v46 = vsel %vm714_vm4, %v1333_v45, 0.0  ;;  %v734_v47 = vpack.c.bf16 %v1333_v45, %v1333_v45  ;;  %v1214_v45 = vld [vmem:[%s1596_s13] ss:$0 sm:$0xff] }
 0x34f   : > { %731 = vadd.xlane.f32.xlu1 %v730_v46 }
 0x350   : > { %1275 = vmatmul.mubr.msk.bf16.vlgmr.msra.gmra.mrb[8].mxu0 %vm714_vm4, %v734_v47 }
 0x351   : > { %1290 = vmatprep.mubr.msk.bf16.mxu0 %vm1353_vm0, %v1352_v1  ;;  %1287 = vmatpush3.bf16.msra.mxu0 %v1324_v19 }
 0x352   : > { %1288 = vmatprep.subr.bf16.mxu0 %v1352_v1 }
 0x353   : > { %728 = vadd.xlane.f32.xlu1 %v727_v48 }
 0x3dc   : > { %v732_v50 = vpop.xlane.xlu1 %731 }
 0x3dd   : > { %1334 = vrcp.f32 %v732_v50 }
 0x3e0   : > { %v729_v62 = vpop.xlane.xlu1 %728 }
 0x3e1   : > { %1336 = vrcp.f32 %v729_v62  ;;  %v1220_v62 = vld [vmem:[%s1597_s14] ss:$0 sm:$0xff] }
 0x3e7   : > { %v1335_v56 = vpop.eup %1334 }
 0x3eb   : > { %v1337_v63 = vpop.eup %1336 }
 0x41a   : > { %v778_v52 = vpop.f32.mrb[4].mxu1 }
 0x41b   : > { %v1270_v53 = vpop.f32.mrb[5].mxu1  ;;  %v834_v0 = vmul.f32 %v1337_v63, %v778_v52 }
 0x41c   : > { %v781_v54 = vpop.f32.mrb[6].mxu1 }
 0x41d   : > { %v1271_v55 = vpop.f32.mrb[7].mxu1 }
 0x423   : > { %v826_v57 = vpop.f32.mrb[8].mxu0 }
 0x424   : > { %v835_v58 = vmul.f32 %v1335_v56, %v826_v57  ;;  %v1276_v59 = vpop.f32.mrb[9].mxu0 }
 0x425   : > { %v829_v60 = vpop.f32.mrb[10].mxu0 }
 0x426   : > { %837 = vrot.lane.b32.xlu1 %v835_v58, %s1357_s26  ;;  %v1277_v61 = vpop.f32.mrb[11].mxu0 }
 0x498   : > { %v838_v2 = vpop.permute.xlu1 %837 }
 0x499   : > { %v840_v4 = vsel %vm619_vm2, %v834_v0, %v838_v2  ;;  %v1221_v0 = vld [vmem:[%s1598_s15] ss:$0 sm:$0xff] }
 0x49a   : > { %v841_v5 = vpack.c.bf16 %v840_v4, %v840_v4 }
 0x49c   : > { %1283 = vmatmul.mubr.msk.bf16.vlgmr.msra.gmra.mrb[8].mxu1 %vm557_vm1, %v841_v5 }
 0x49d   : > { %1302 = vmatprep.mubr.msk.bf16.mxu1 %vm1353_vm0, %v1352_v1  ;;  %1295 = vmatpush3.bf16.msra.mxu1 %v1326_v30 }
 0x49e   : > { %1296 = vmatprep.subr.bf16.mxu1 %v1352_v1 }
 0x4a1   : > { %1297 = vmatpush3.bf16.msra.mxu1 %v1327_v31 }
 0x4a2   : > { %1298 = vmatprep.subr.bf16.mxu1 %v1352_v1 }
 0x4a5   : > { %1299 = vmatpush3.bf16.msra.mxu1 %v1328_v32 }
 0x4a6   : > { %1300 = vmatprep.subr.bf16.mxu1 %v1352_v1 }
 0x4a9   : > { %1301 = vmatpush3.bf16.msra.mxu1 %v1329_v33 }
 0x56f   : > { %v902_v7 = vpop.f32.mrb[8].mxu1 }
 0x570   : > { %v903_v8 = vadd.f32 %v1204_v6, %v902_v7  ;;  %v1284_v9 = vpop.f32.mrb[9].mxu1 }
 0x571   : > { %v905_v10 = vpop.f32.mrb[10].mxu1 }
 0x572   : > { %v1285_v11 = vpop.f32.mrb[11].mxu1  ;;  %v908_v12 = vadd.f32 %v903_v8, %v1473_v3  ;;  %v1325_v3 = vld [vmem:[%s1593_s10 + $0x8] sm:$0xff]  }
 0x573   : > { %1289 = vmatpush3.bf16.msra.mxu0 %v1325_v3 }
 0x574   : > { %v911_v13 = vsel %vm557_vm1, %v908_v12, 0.0 }
 0x575   : > { %912 = vadd.xlane.f32.xlu0 %v911_v13 }
 0x602   : > { %v913_v14 = vpop.xlane.xlu0 %912 }
 0x603   : > { %v915_v15 = vmul.f32 0.03125, %v913_v14 }
 0x605   : > { %v916_v16 = vsub.f32 %v908_v12, %v915_v15 }
 0x607   : > { %v917_v17 = vmul.f32 %v916_v16, %v916_v16 }
 0x609   : > { %v918_v18 = vsel %vm557_vm1, %v917_v17, 0.0 }
 0x60a   : > { %919 = vadd.xlane.f32.xlu1 %v918_v18 }
 0x697   : > { %v920_v20 = vpop.xlane.xlu1 %919 }
 0x698   : > { %v921_v21 = vmul.f32 0.03125, %v920_v20 }
 0x69a   : > { %v922_v22 = vadd.f32 1e-12, %v921_v21 }
 0x69c   : > { %1338 = vrsqrt.f32 %v922_v22 }
 0x6a6   : > { %v1339_v23 = vpop.eup %1338 }
 0x6a7   : > { %v924_v25 = vmul.f32 %v1339_v23, %v916_v16 }
 0x6a9   : > { %v931_v27 = vmul.f32 %v1208_v24, %v924_v25 }
 0x6ab   : > { %v938_v28 = vadd.f32 %v1209_v26, %v931_v27 }
 0x6ad   : > { %v939_v29 = vpack.c.bf16 %v938_v28, %v938_v28 }
 0x6af   : > { %1291 = vmatmul.mubr.msk.bf16.vlgmr.msra.gmra.mrb[12].mxu0 %vm557_vm1, %v939_v29 }
 0x782   : > { %v1000_v35 = vpop.f32.mrb[12].mxu0 }
 0x783   : > { %v1001_v36 = vadd.f32 %v1210_v34, %v1000_v35  ;;  %v1292_v37 = vpop.f32.mrb[13].mxu0 }
 0x784   : > { %v1003_v38 = vpop.f32.mrb[14].mxu0 }
 0x785   : > { %v1007_v39 = vmul.f32 0.70710677, %v1001_v36  ;;  %v1293_v40 = vpop.f32.mrb[15].mxu0  ;;  %v1006_v42 = vmul.f32 0.5, %v1001_v36 }
 0x787   : > { %1340 = verf.f32 %v1007_v39 }
 0x791   : > { %v1341_v41 = vpop.eup %1340 }
 0x792   : > { %v1009_v43 = vadd.f32 1.0, %v1341_v41 }
 0x794   : > { %v1010_v1 = vmul.f32 %v1009_v43, %v1006_v42 }
 0x796   : > { %v1011_v44 = vpack.c.bf16 %v1010_v1, %v1010_v1 }
 0x798   : > { %1303 = vmatmul.mubr.msk.bf16.vlgmr.msra.gmra.mrb[12].mxu1 %vm1051_vm5, %v1011_v44 }
 0x86b   : > { %v1089_v46 = vpop.f32.mrb[12].mxu1 }
 0x86c   : > { %v1090_v47 = vadd.f32 %v1214_v45, %v1089_v46  ;;  %v1304_v48 = vpop.f32.mrb[13].mxu1 }
 0x86d   : > { %v1092_v49 = vpop.f32.mrb[14].mxu1 }
 0x86e   : > { %v1305_v50 = vpop.f32.mrb[15].mxu1  ;;  %v1095_v51 = vadd.f32 %v1090_v47, %v938_v28 }
 0x870   : > { %v1098_v52 = vsel %vm557_vm1, %v1095_v51, 0.0 }
 0x871   : > { %1099 = vadd.xlane.f32.xlu0 %v1098_v52 }
 0x8fe   : > { %v1100_v53 = vpop.xlane.xlu0 %1099 }
 0x8ff   : > { %v1101_v54 = vmul.f32 0.03125, %v1100_v53 }
 0x901   : > { %v1102_v55 = vsub.f32 %v1095_v51, %v1101_v54 }
 0x903   : > { %v1103_v56 = vmul.f32 %v1102_v55, %v1102_v55 }
 0x905   : > { %v1104_v57 = vsel %vm557_vm1, %v1103_v56, 0.0 }
 0x906   : > { %1105 = vadd.xlane.f32.xlu0 %v1104_v57 }
 0x993   : > { %v1106_v58 = vpop.xlane.xlu0 %1105 }
 0x994   : > { %v1107_v59 = vmul.f32 0.03125, %v1106_v58 }
 0x996   : > { %v1108_v60 = vadd.f32 1e-12, %v1107_v59 }
 0x998   : > { %1342 = vrsqrt.f32 %v1108_v60 }
 0x9a2   : > { %v1343_v61 = vpop.eup %1342 }
 0x9a3   : > { %v1110_v63 = vmul.f32 %v1343_v61, %v1102_v55 }
 0x9a5   : > { %v1117_v2 = vmul.f32 %v1220_v62, %v1110_v63 }
 0x9a7   : > { %v1124_v4 = vadd.f32 %v1221_v0, %v1117_v2 }
 0x9a9   : > { %1125 = vst.msk [vmem:[%s530_s27] sm:$0xff] %vm557_vm1, %v1124_v4 }
 0x9aa PF: > { %s26_s19 = sadd.s32 1, %s1350_s19  }
 0x9ab   : > { %p23_p4 = scmp.ge.s32.totalorder %s26_s19, 4  }
 0x9ad   :  { %25 = sbr.rel (!%p23_p4) target bundleno = 2 (0x2), region = 117 }

// kernel: bert_lm_forward.3
= control target key start
LH: loop header
LB: loop body
LE: loop exit
PB: predicated region body
PF: predicated region fallthrough
CT: control target
= control target key end

     0   :  { %s1476_s21 = smov 0   ;;  %s1624_s0 = inlined_call_operand.vmem [shape: f32[16,32], index: 0, kind: input, shape index: {}]   ;;  %s1625_s1 = inlined_call_operand.vmem [shape: f32[2,1,8], index: 1, kind: input, shape index: {}]   ;;  %s1626_s2 = inlined_call_operand.vmem [shape: f32[1,32], index: 2, kind: input, shape index: {}]   ;;  %s1627_s3 = inlined_call_operand.vmem [shape: f32[1,32], index: 3, kind: input, shape index: {}]   ;;  %s1628_s4 = inlined_call_operand.vmem [shape: bf16[32,96], index: 4, kind: input, shape index: {}]   ;;  %s1629_s5 = inlined_call_operand.vmem [shape: f32[1,96], index: 5, kind: input, shape index: {}]   ;;  %s1630_s6 = inlined_call_operand.vmem [shape: bf16[32,32], index: 6, kind: input, shape index: {}]   ;;  %s1631_s7 = inlined_call_operand.vmem [shape: f32[1,32], index: 7, kind: input, shape index: {}]   ;;  %s1632_s8 = inlined_call_operand.vmem [shape: f32[1,32], index: 8, kind: input, shape index: {}]   ;;  %s1633_s9 = inlined_call_operand.vmem [shape: f32[1,32], index: 9, kind: input, shape index: {}]   ;;  %s1634_s10 = inlined_call_operand.vmem [shape: bf16[32,64], index: 10, kind: input, shape index: {}]   ;;  %s1635_s11 = inlined_call_operand.vmem [shape: f32[1,64], index: 11, kind: input, shape index: {}]   ;;  %s1636_s12 = inlined_call_operand.vmem [shape: bf16[64,32], index: 12, kind: input, shape index: {}]   ;;  %s1637_s13 = inlined_call_operand.vmem [shape: f32[1,32], index: 13, kind: input, shape index: {}]   ;;  %s1638_s14 = inlined_call_operand.vmem [shape: f32[1,32], index: 14, kind: input, shape index: {}]   ;;  %s1639_s15 = inlined_call_operand.vmem [shape: f32[1,32], index: 15, kind: input, shape index: {}]   ;;  %s1640_s16 = inlined_call_operand.vmem [shape: f32[16,32], index: 16, kind: output, shape index: {}]  }
   0x1   :  { %1641 = sst [smem:[#allocation2_spill]] %s1624_s0 }
   0x2 LB: > { %s1217_s22 = sadd.s32 4294967295, %s1383_s21   ;;  %p1221_p0 = scmp.ge.s32.totalorder %s1383_s21, 1  ;;  %s1383_s21 = sphi %s1476_s21, %s26_s21  }
   0x3   : > { %p469_p1 = scmp.lt.s32.totalorder %s1383_s21, 3 }
   0x5   : > { %p470_p2 = pnand %p1221_p0, %p469_p1 }
   0x6   : > { %p520_p3 = scmp.lt.s32.totalorder (!%p470_p2), %s1217_s22, 1  ;;  %vm535_vm0 = vcmask (!%p470_p2), 261120   ;;  %s1642_s26 = sld [smem:[#allocation2_spill]] (!%p470_p2)  ;;  %v1351_v7 = vld [vmem:[%s1628_s4] sm:$0xff] (!%p470_p2)   ;;  %v1385_v8 = vmov (!%p470_p2), 0.0   ;;  %v1352_v9 = vld [vmem:[%s1628_s4 + $0x8] sm:$0xff] (!%p470_p2)  }
   0x7   : > { %473 = sbr.rel (%p470_p2) target bundleno = 2787 (0xae3), region = 84  ;;  %1277 = vmatprep.subr.bf16.mxu0 (!%p470_p2), %v1385_v8  ;;  %1285 = vmatprep.subr.bf16.mxu1 (!%p470_p2), %v1385_v8  ;;  %vm1386_vm1 = vmmov (!%p470_p2), 0   ;;  %v1224_v14 = vld [vmem:[%s1626_s2] ss:$0 sm:$0xff] (!%p470_p2)  ;;  %s1389_s28 = smov (!%p470_p2), 64   ;;  %vm649_vm2 = vcmask (!%p470_p2), 130048  }
   0x8   : > { %1278 = vmatpush3.bf16.msra.mxu0 (!%p470_p2), %v1351_v7  ;;  %1281 = vmatprep.mubr.msk.bf16.mxu0 (!%p470_p2), %vm1386_vm1, %v1385_v8  ;;  %v1225_v16 = vld [vmem:[%s1627_s3] ss:$0 sm:$0xff] (!%p470_p2)  ;;  %vm770_vm3 = vcmask (!%p470_p2), 1043456   ;;  %vm744_vm4 = vcmask (!%p470_p2), 64512   ;;  %s1390_s24 = smov (!%p470_p2), 16   ;;  %vm1080_vm5 = vcmask (!%p470_p2), 523264  }
   0x9   : > { %1279 = vmatprep.subr.bf16.mxu0 (!%p470_p2), %v1385_v8  ;;  %1287 = vmatprep.mubr.msk.bf16.mxu1 (!%p470_p2), %vm1386_vm1, %v1385_v8  ;;  %v1226_v20 = vld [vmem:[%s1629_s5] ss:$0 sm:$0xff] (!%p470_p2) }
   0xc   : > { %1280 = vmatpush3.bf16.msra.mxu0 (!%p470_p2), %v1352_v9 }
   0xd   : > { %1291 = vmatprep.subr.bf16.mxu0 (!%p470_p2), %v1385_v8 }
   0xe   : > { %s1644_s22 = smov (!%p520_p3, %s1217_s22), 1 }
   0xf   : > { %s1222_s23 = sshll.u32 %s1644_s22, 3  ;;  %s526_s0 = scalar_lea.vmem %s1625_s1, %s1644_s22 }
  0x10   : > { %s523_s27 = scalar_lea.vmem %s1642_s26, %s1222_s23  ;;  %s1387_s26 = smov 112   ;;  %v1230_v37 = vld [vmem:[%s526_s0] ss:$0 sm:$0xff] }
  0x11   : > { %v532_v0 = vld [vmem:[%s523_s27] sm:$0xff]  ;;  %s1388_s27 = smov 96   ;;  %s530_s29 = scalar_lea.vmem %s1640_s16, %s1222_s23 }
  0x12   : > { %v536_v1 = vsel %vm535_vm0, %v532_v0, 0.0 }
  0x13   : > { %537 = vadd.xlane.f32.xlu0 %v536_v1 }
  0xa0   : > { %v538_v2 = vpop.xlane.xlu0 %537 }
  0xa1   : > { %v540_v3 = vmul.f32 0.03125, %v538_v2  ;;  %v1354_v2 = vld [vmem:[%s1630_s6 + $0x8] sm:$0xff]  }
  0xa3   : > { %v541_v4 = vsub.f32 %v532_v0, %v540_v3  ;;  %v1353_v0 = vld [vmem:[%s1630_s6] sm:$0xff]  }
  0xa5   : > { %v542_v5 = vmul.f32 %v541_v4, %v541_v4 }
  0xa7   : > { %v543_v6 = vsel %vm535_vm0, %v542_v5, 0.0 }
  0xa8   : > { %544 = vadd.xlane.f32.xlu0 %v543_v6 }
 0x135   : > { %v545_v10 = vpop.xlane.xlu0 %544 }
 0x136   : > { %v546_v11 = vmul.f32 0.03125, %v545_v10 }
 0x138   : > { %v547_v12 = vadd.f32 1e-12, %v546_v11 }
 0x13a   : > { %1361 = vrsqrt.f32 %v547_v12 }
 0x144   : > { %v1362_v13 = vpop.eup %1361 }
 0x145   : > { %v549_v15 = vmul.f32 %v1362_v13, %v541_v4 }
 0x147   : > { %v556_v17 = vmul.f32 %v1224_v14, %v549_v15 }
 0x149   : > { %v1514_v18 = vadd.f32 %v1225_v16, %v556_v17 }
 0x14b   : > { %v564_v19 = vpack.c.bf16 %v1514_v18, %v1514_v18 }
 0x14d   : > { %1282 = vmatmul.mubr.msk.bf16.vlgmr.msra.gmra.mrb[0].mxu0 %vm535_vm0, %v564_v19 }
 0x14e   : > { %1293 = vmatprep.mubr.msk.bf16.mxu0 %vm1386_vm1, %v1385_v8 }
 0x220   : > { %v625_v21 = vpop.f32.mrb[0].mxu0 }
 0x221   : > { %v626_v22 = vadd.f32 %v1226_v20, %v625_v21  ;;  %v1283_v23 = vpop.f32.mrb[1].mxu0  ;;  %v1235_v21 = vld [vmem:[%s1631_s7] ss:$0 sm:$0xff] }
 0x222   : > { %v628_v24 = vpop.f32.mrb[2].mxu0 }
 0x223   : > { %v631_v25 = vmul.f32 0.25, %v626_v22  ;;  %v633_v26 = vpack.c.bf16 %v626_v22, %v626_v22  ;;  %v1284_v27 = vpop.f32.mrb[3].mxu0 }
 0x225   : > { %v632_v28 = vpack.c.bf16 %v631_v25, %v631_v25  ;;  %638 = vrot.lane.b32.xlu1 %v633_v26, %s1387_s26 }
 0x227   : > { %635 = vrot.lane.b32.xlu0 %v632_v28, %s1387_s26 }
 0x297   : > { %v639_v29 = vpop.permute.xlu1 %638 }
 0x298   : > { %696 = vrot.lane.b32.xlu1 %v639_v29, %s1388_s27  ;;  %814 = vrot.lane.b32.xlu0 %v639_v29, %s1389_s28 }
 0x299   : > { %v636_v32 = vpop.permute.xlu0 %635 }
 0x29c   : > { %647 = vrot.lane.b32.xlu1 %v633_v26, %s1388_s27 }
 0x30a   : > { %v697_v30 = vpop.permute.xlu1 %696  ;;  %v815_v35 = vpop.permute.xlu0 %814 }
 0x30b   : > { %v702_v31 = vsel %vm649_vm2, %v697_v30, 0  ;;  %v820_v36 = vsel %vm770_vm3, %v815_v35, 0 }
 0x30c   : > { %1292 = vmatpush3.bf16.xpose.msra.mxu0 %v702_v31 }
 0x30d   : > { %1303 = vmatprep.subr.bf16.mxu0 %v1385_v8 }
 0x30e   : > { %v648_v33 = vpop.permute.xlu1 %647 }
 0x30f   : > { %v654_v34 = vsel %vm649_vm2, %v648_v33, 0 }
 0x310   : > { %1286 = vmatpush3.bf16.xpose.msra.mxu1 %v654_v34  ;;  %v1355_v34 = vld [vmem:[%s1634_s10] sm:$0xff]  }
 0x311   : > { %1297 = vmatprep.subr.bf16.mxu1 %v1385_v8 }
 0x313   : > { %1294 = vmatmul.mubr.msk.bf16.vlgmr.msra.gmra.mrb[4].mxu0 %vm649_vm2, %v636_v32 }
 0x314   : > { %1304 = vmatpush3.bf16.msra.mxu0 %v820_v36  ;;  %1305 = vmatprep.mubr.msk.bf16.mxu0 %vm1386_vm1, %v1385_v8 }
 0x315   : > { %1317 = vmatprep.subr.bf16.mxu0 %v1385_v8 }
 0x317   : > { %1288 = vmatmul.mubr.msk.bf16.vlgmr.msra.gmra.mrb[0].mxu1 %vm649_vm2, %v632_v28 }
 0x318   : > { %1299 = vmatprep.mubr.msk.bf16.mxu1 %vm1386_vm1, %v1385_v8 }
 0x3e6   : > { %v738_v38 = vpop.f32.mrb[4].mxu0 }
 0x3e7   : > { %v739_v39 = vadd.f32 %v1230_v37, %v738_v38  ;;  %v1295_v40 = vpop.f32.mrb[5].mxu0 }
 0x3e8   : > { %v741_v41 = vpop.f32.mrb[6].mxu0 }
 0x3e9   : > { %v1296_v42 = vpop.f32.mrb[7].mxu0  ;;  %v748_v43 = vsel %vm744_vm4, %v739_v39, -inf  ;;  %v1240_v41 = vld [vmem:[%s1633_s9] ss:$0 sm:$0xff] }
 0x3ea   : > { %v690_v44 = vpop.f32.mrb[0].mxu1  ;;  %749 = vmax.xlane.f32.xlu1 %v748_v43 }
 0x3eb   : > { %v691_v45 = vadd.f32 %v1230_v37, %v690_v44  ;;  %v1289_v46 = vpop.f32.mrb[1].mxu1 }
 0x3ec   : > { %v693_v47 = vpop.f32.mrb[2].mxu1  ;;  %v1358_v46 = vld [vmem:[%s1636_s12 + $0x8] sm:$0xff]  }
 0x3ed   : > { %v1290_v48 = vpop.f32.mrb[3].mxu1  ;;  %v745_v49 = vsel %vm744_vm4, %v691_v45, -inf  ;;  %v1359_v47 = vld [vmem:[%s1636_s12 + $0x10] sm:$0xff]  }
 0x3ee   : > { %746 = vmax.xlane.f32.xlu0 %v745_v49  ;;  %v1360_v48 = vld [vmem:[%s1636_s12 + $0x18] sm:$0xff]   ;;  %v1241_v49 = vld [vmem:[%s1635_s11] ss:$0 sm:$0xff] }
 0x3fb   : > { %765 = vrot.lane.b32.xlu1 %v633_v26, %s1389_s28 }
 0x477   : > { %v750_v50 = vpop.xlane.xlu1 %749 }
 0x478   : > { %v752_v51 = vsub.f32 %v739_v39, %v750_v50  ;;  %v1239_v39 = vld [vmem:[%s1632_s8] ss:$0 sm:$0xff] }
 0x47a   : > { %v755_v52 = vmul.f32 1.442695, %v752_v51 }
 0x47b   : > { %v747_v53 = vpop.xlane.xlu0 %746  ;;  %v766_v54 = vpop.permute.xlu1 %765 }
 0x47c   : > { %1363 = vpow2.f32 %v755_v52  ;;  %v751_v55 = vsub.f32 %v691_v45, %v747_v53  ;;  %v772_v56 = vsel %vm770_vm3, %v766_v54, 0  ;;  %v1357_v45 = vld [vmem:[%s1636_s12] sm:$0xff]  }
 0x47d   : > { %1298 = vmatpush3.bf16.msra.mxu1 %v772_v56 }
 0x47e   : > { %v753_v57 = vmul.f32 1.442695, %v751_v55  ;;  %1309 = vmatprep.subr.bf16.mxu1 %v1385_v8 }
 0x480   : > { %1365 = vpow2.f32 %v753_v57 }
 0x486   : > { %v1364_v58 = vpop.eup %1363 }
 0x487   : > { %v760_v59 = vsel %vm744_vm4, %v1364_v58, 0.0  ;;  %v764_v60 = vpack.c.bf16 %v1364_v58, %v1364_v58 }
 0x488   : > { %761 = vadd.xlane.f32.xlu0 %v760_v59 }
 0x489   : > { %1306 = vmatmul.mubr.msk.bf16.vlgmr.msra.gmra.mrb[8].mxu0 %vm744_vm4, %v764_v60  ;;  %v1245_v60 = vld [vmem:[%s1637_s13] ss:$0 sm:$0xff] }
 0x48a   : > { %v1366_v61 = vpop.eup %1365  ;;  %1321 = vmatprep.mubr.msk.bf16.mxu0 %vm1386_vm1, %v1385_v8  ;;  %1318 = vmatpush3.bf16.msra.mxu0 %v1355_v34 }
 0x48b   : > { %v757_v62 = vsel %vm744_vm4, %v1366_v61, 0.0  ;;  %v763_v63 = vpack.c.bf16 %v1366_v61, %v1366_v61  ;;  %1319 = vmatprep.subr.bf16.mxu0 %v1385_v8 }
 0x48c   : > { %758 = vadd.xlane.f32.xlu1 %v757_v62 }
 0x48d   : > { %1300 = vmatmul.mubr.msk.bf16.vlgmr.msra.gmra.mrb[4].mxu1 %vm744_vm4, %v763_v63 }
 0x48e   : > { %1313 = vmatprep.mubr.msk.bf16.mxu1 %vm1386_vm1, %v1385_v8  ;;  %1310 = vmatpush3.bf16.msra.mxu1 %v1353_v0 }
 0x48f   : > { %1311 = vmatprep.subr.bf16.mxu1 %v1385_v8 }
 0x492   : > { %1312 = vmatpush3.bf16.msra.mxu1 %v1354_v2 }
 0x493   : > { %1325 = vmatprep.subr.bf16.mxu1 %v1385_v8 }
 0x515   : > { %v762_v1 = vpop.xlane.xlu0 %761 }
 0x516   : > { %1367 = vrcp.f32 %v762_v1 }
 0x519   : > { %v759_v14 = vpop.xlane.xlu1 %758 }
 0x51a   : > { %1369 = vrcp.f32 %v759_v14  ;;  %v1251_v14 = vld [vmem:[%s1638_s14] ss:$0 sm:$0xff] }
 0x520   : > { %v1368_v3 = vpop.eup %1367 }
 0x524   : > { %v1370_v15 = vpop.eup %1369 }
 0x55c   : > { %v856_v4 = vpop.f32.mrb[8].mxu0 }
 0x55d   : > { %v865_v5 = vmul.f32 %v1368_v3, %v856_v4  ;;  %v1307_v6 = vpop.f32.mrb[9].mxu0 }
 0x55e   : > { %v859_v7 = vpop.f32.mrb[10].mxu0 }
 0x55f   : > { %867 = vrot.lane.b32.xlu0 %v865_v5, %s1390_s24  ;;  %v1308_v9 = vpop.f32.mrb[11].mxu0 }
 0x560   : > { %v808_v10 = vpop.f32.mrb[4].mxu1 }
 0x561   : > { %v1301_v11 = vpop.f32.mrb[5].mxu1  ;;  %v864_v16 = vmul.f32 %v1370_v15, %v808_v10 }
 0x562   : > { %v811_v12 = vpop.f32.mrb[6].mxu1 }
 0x563   : > { %v1302_v13 = vpop.f32.mrb[7].mxu1 }
 0x5d1   : > { %v868_v17 = vpop.permute.xlu0 %867 }
 0x5d2   : > { %v870_v19 = vsel %vm649_vm2, %v864_v16, %v868_v17  ;;  %v1252_v16 = vld [vmem:[%s1639_s15] ss:$0 sm:$0xff] }
 0x5d3   : > { %v871_v20 = vpack.c.bf16 %v870_v19, %v870_v19 }
 0x5d5   : > { %1314 = vmatmul.mubr.msk.bf16.vlgmr.msra.gmra.mrb[8].mxu1 %vm535_vm0, %v871_v20 }
 0x5d6   : > { %1333 = vmatprep.mubr.msk.bf16.mxu1 %vm1386_vm1, %v1385_v8  ;;  %1326 = vmatpush3.bf16.msra.mxu1 %v1357_v45 }
 0x5d7   : > { %1327 = vmatprep.subr.bf16.mxu1 %v1385_v8 }
 0x5da   : > { %1328 = vmatpush3.bf16.msra.mxu1 %v1358_v46 }
 0x5db   : > { %1329 = vmatprep.subr.bf16.mxu1 %v1385_v8 }
 0x5de   : > { %1330 = vmatpush3.bf16.msra.mxu1 %v1359_v47 }
 0x5df   : > { %1331 = vmatprep.subr.bf16.mxu1 %v1385_v8 }
 0x5e2   : > { %1332 = vmatpush3.bf16.msra.mxu1 %v1360_v48 }
 0x6a8   : > { %v932_v22 = vpop.f32.mrb[8].mxu1 }
 0x6a9   : > { %v933_v23 = vadd.f32 %v1235_v21, %v932_v22  ;;  %v1315_v24 = vpop.f32.mrb[9].mxu1 }
 0x6aa   : > { %v935_v25 = vpop.f32.mrb[10].mxu1 }
 0x6ab   : > { %v1316_v26 = vpop.f32.mrb[11].mxu1  ;;  %v938_v27 = vadd.f32 %v933_v23, %v1514_v18  ;;  %v1356_v18 = vld [vmem:[%s1634_s10 + $0x8] sm:$0xff]  }
 0x6ac   : > { %1320 = vmatpush3.bf16.msra.mxu0 %v1356_v18 }
 0x6ad   : > { %v941_v28 = vsel %vm535_vm0, %v938_v27, 0.0 }
 0x6ae   : > { %942 = vadd.xlane.f32.xlu0 %v941_v28 }
 0x73b   : > { %v943_v29 = vpop.xlane.xlu0 %942 }
 0x73c   : > { %v944_v30 = vmul.f32 0.03125, %v943_v29 }
 0x73e   : > { %v945_v31 = vsub.f32 %v938_v27, %v944_v30 }
 0x740   : > { %v946_v32 = vmul.f32 %v945_v31, %v945_v31 }
 0x742   : > { %v947_v33 = vsel %vm535_vm0, %v946_v32, 0.0 }
 0x743   : > { %948 = vadd.xlane.f32.xlu1 %v947_v33 }
 0x7d0   : > { %v949_v35 = vpop.xlane.xlu1 %948 }
 0x7d1   : > { %v950_v36 = vmul.f32 0.03125, %v949_v35 }
 0x7d3   : > { %v951_v37 = vadd.f32 1e-12, %v950_v36 }
 0x7d5   : > { %1371 = vrsqrt.f32 %v951_v37 }
 0x7df   : > { %v1372_v38 = vpop.eup %1371 }
 0x7e0   : > { %v953_v40 = vmul.f32 %v1372_v38, %v945_v31 }
 0x7e2   : > { %v960_v42 = vmul.f32 %v1239_v39, %v953_v40 }
 0x7e4   : > { %v967_v43 = vadd.f32 %v1240_v41, %v960_v42 }
 0x7e6   : > { %v968_v44 = vpack.c.bf16 %v967_v43, %v967_v43 }
 0x7e8   : > { %1322 = vmatmul.mubr.msk.bf16.vlgmr.msra.gmra.mrb[12].mxu0 %vm535_vm0, %v968_v44 }
 0x8bb   : > { %v1029_v50 = vpop.f32.mrb[12].mxu0 }
 0x8bc   : > { %v1030_v51 = vadd.f32 %v1241_v49, %v1029_v50  ;;  %v1323_v52 = vpop.f32.mrb[13].mxu0 }
 0x8bd   : > { %v1032_v53 = vpop.f32.mrb[14].mxu0 }
 0x8be   : > { %v1036_v54 = vmul.f32 0.70710677, %v1030_v51  ;;  %v1324_v55 = vpop.f32.mrb[15].mxu0  ;;  %v1035_v57 = vmul.f32 0.5, %v1030_v51 }
 0x8c0   : > { %1373 = verf.f32 %v1036_v54 }
 0x8ca   : > { %v1374_v56 = vpop.eup %1373 }
 0x8cb   : > { %v1038_v58 = vadd.f32 1.0, %v1374_v56 }
 0x8cd   : > { %v1039_v8 = vmul.f32 %v1038_v58, %v1035_v57 }
 0x8cf   : > { %v1040_v59 = vpack.c.bf16 %v1039_v8, %v1039_v8 }
 0x8d1   : > { %1334 = vmatmul.mubr.msk.bf16.vlgmr.msra.gmra.mrb[12].mxu1 %vm1080_vm5, %v1040_v59 }
 0x9a4   : > { %v1118_v61 = vpop.f32.mrb[12].mxu1 }
 0x9a5   : > { %v1119_v62 = vadd.f32 %v1245_v60, %v1118_v61  ;;  %v1335_v63 = vpop.f32.mrb[13].mxu1 }
 0x9a6   : > { %v1121_v0 = vpop.f32.mrb[14].mxu1 }
 0x9a7   : > { %v1336_v1 = vpop.f32.mrb[15].mxu1  ;;  %v1124_v2 = vadd.f32 %v1119_v62, %v967_v43 }
 0x9a9   : > { %v1127_v3 = vsel %vm535_vm0, %v1124_v2, 0.0 }
 0x9aa   : > { %1128 = vadd.xlane.f32.xlu1 %v1127_v3 }
 0xa37   : > { %v1129_v4 = vpop.xlane.xlu1 %1128 }
 0xa38   : > { %v1130_v5 = vmul.f32 0.03125, %v1129_v4 }
 0xa3a   : > { %v1131_v6 = vsub.f32 %v1124_v2, %v1130_v5 }
 0xa3c   : > { %v1132_v7 = vmul.f32 %v1131_v6, %v1131_v6 }
 0xa3e   : > { %v1133_v9 = vsel %vm535_vm0, %v1132_v7, 0.0 }
 0xa3f   : > { %1134 = vadd.xlane.f32.xlu1 %v1133_v9 }
 0xacc   : > { %v1135_v10 = vpop.xlane.xlu1 %1134 }
 0xacd   : > { %v1136_v11 = vmul.f32 0.03125, %v1135_v10 }
 0xacf   : > { %v1137_v12 = vadd.f32 1e-12, %v1136_v11 }
 0xad1   : > { %1375 = vrsqrt.f32 %v1137_v12 }
 0xadb   : > { %v1376_v13 = vpop.eup %1375 }
 0xadc   : > { %v1139_v15 = vmul.f32 %v1376_v13, %v1131_v6 }
 0xade   : > { %v1146_v17 = vmul.f32 %v1251_v14, %v1139_v15 }
 0xae0   : > { %v1153_v19 = vadd.f32 %v1252_v16, %v1146_v17 }
 0xae2   : > { %1154 = vst.msk [vmem:[%s530_s29] sm:$0xff] %vm535_vm0, %v1153_v19 }
 0xae3 PF: > { %s26_s21 = sadd.s32 1, %s1383_s21  }
 0xae4   : > { %p23_p4 = scmp.ge.s32.totalorder %s26_s21, 4  }
 0xae6   :  { %25 = sbr.rel (!%p23_p4) target bundleno = 2 (0x2), region = 117 }

</bundles_post_ra>
